<compile_context>
chip_gen: v7x
topology: tpu7x:2x2x1
jax: 0.10.0
libtpu: 0.0.40
codegen_flags: <defaults>
</compile_context>

<pallas_src>
import functools
import math

import jax
import jax.numpy as jnp
from jax import lax
from jax.experimental import pallas as pl
from jax.experimental.pallas import tpu as pltpu


def _layernorm(y, gamma, beta, eps=1e-5):
    mu = jnp.mean(y, axis=-1, keepdims=True)
    d = y - mu
    var = jnp.mean(d * d, axis=-1, keepdims=True)
    return d * lax.rsqrt(var + eps) * gamma + beta


def transformer_block_kernel(
    x_ref,                                      # (S, D)  f32   full sequence, current batch
    wq_ref, wkv_ref, wo_ref, w1_ref, w2_ref,    # bf16 weights
    bkv_ref,                                    # (1, 2D) f32   [bk | bv]
    vecs_ref,                                   # (7, D)  f32   [bq, bo, b2, g1, be1, g2, be2]
    b1_ref,                                     # (1, FF) f32
    o_ref,                                      # (block_s, D)  output rows
    kv_ref,                                     # scratch (S, 2D) bf16 — persists across s tiles
    attn_ref,                                   # scratch (block_s, D) f32 — per-head output slab
    *, nhead, block_s,
):
    s_idx = pl.program_id(1)
    S, D = x_ref.shape
    hd = D // nhead
    scale = 1.0 / math.sqrt(hd)

    # --- K/V projection: computed once per batch element (first sequence tile only) ---
    @pl.when(s_idx == 0)
    def _():
        x_bf = x_ref[...].astype(jnp.bfloat16)
        kv = jnp.dot(x_bf, wkv_ref[...], preferred_element_type=jnp.float32) + bkv_ref[...]
        kv_ref[...] = kv.astype(jnp.bfloat16)

    # --- query / residual rows sliced from the resident full-sequence block ---
    row0 = pl.multiple_of(s_idx * block_s, block_s)
    xq = x_ref[pl.ds(row0, block_s), :]                         # (tS, D) f32 (residual path)
    xq_bf = xq.astype(jnp.bfloat16)

    bq, bo, b2 = vecs_ref[0:1, :], vecs_ref[1:2, :], vecs_ref[2:3, :]
    g1, be1 = vecs_ref[3:4, :], vecs_ref[4:5, :]
    g2, be2 = vecs_ref[5:6, :], vecs_ref[6:7, :]

    q = jnp.dot(xq_bf, wq_ref[...], preferred_element_type=jnp.float32) + bq    # (tS, D)
    q_bf = q.astype(jnp.bfloat16)

    # --- per-head attention; head outputs written into the (tS, D) slab -----------------
    # (static loop: nhead is a small compile-time constant; slab writes keep only one
    #  (tS, S) score buffer live at a time.  For real sizes keep hd a multiple of 128
    #  so the lane slices below stay tile-aligned.)
    for h in range(nhead):
        lo, hi = h * hd, (h + 1) * hd
        kh = kv_ref[:, lo:hi]                                   # (S, hd) bf16
        vh = kv_ref[:, D + lo:D + hi]                           # (S, hd) bf16
        s = lax.dot_general(q_bf[:, lo:hi], kh, (((1,), (1,)), ((), ())),
                            preferred_element_type=jnp.float32) * scale          # (tS, S)
        s = s - jnp.max(s, axis=-1, keepdims=True)
        p = jnp.exp(s)
        # approx reciprocal runs on the otherwise-idle EUP slot; ~1e-2 rel. error,
        # acceptable for eval-mode inference (documented tolerance below).
        p = p * pl.reciprocal(jnp.sum(p, axis=-1, keepdims=True), approx=True)
        attn_ref[:, lo:hi] = jnp.dot(p.astype(jnp.bfloat16), vh,
                                     preferred_element_type=jnp.float32)         # (tS, hd)

    # --- single full-K out-projection ----------------------------------------------------
    attn = jnp.dot(attn_ref[...].astype(jnp.bfloat16), wo_ref[...],
                   preferred_element_type=jnp.float32) + bo

    # --- residual + norm1 -----------------------------------------------------------------
    x1 = _layernorm(xq + attn, g1, be1)

    # --- feed-forward (relu; dropout = identity in eval mode) ------------------------------
    h1 = jnp.dot(x1.astype(jnp.bfloat16), w1_ref[...],
                 preferred_element_type=jnp.float32) + b1_ref[...]
    h1 = jnp.maximum(h1, 0.0)
    ff = jnp.dot(h1.astype(jnp.bfloat16), w2_ref[...],
                 preferred_element_type=jnp.float32) + b2

    # --- residual + norm2 -----------------------------------------------------------------
    o_ref[...] = _layernorm(x1 + ff, g2, be2).astype(o_ref.dtype)


def _largest_divisor_at_most(n, target):
    target = max(1, min(n, target))
    for d in range(target, 0, -1):
        if n % d == 0:
            return d
    return n


def _const_spec(shape, buffers):
    idx_map = lambda b, s, _n=len(shape): (0,) * _n
    if buffers is None:
        return pl.BlockSpec(shape, idx_map)
    # single-buffer constant-index weights (index never changes -> no pipelining needed)
    return pl.BlockSpec(shape, idx_map, pipeline_mode=pl.Buffered(buffers))


def transformer_block(x, params, nhead, *, block_s=None, weight_buffers=1):
    B, S, D = x.shape
    dim_ff = params["w1"].shape[1]
    assert D % nhead == 0

    block_s = _largest_divisor_at_most(S, 256 if block_s is None else block_s)
    n_s = S // block_s

    bf16 = jnp.bfloat16
    # Matmul weights in bf16; K and V weights fused into one (D, 2D) matrix.
    wq = params["wq"].astype(bf16)
    wkv = jnp.concatenate([params["wk"], params["wv"]], axis=1).astype(bf16)
    wo = params["wo"].astype(bf16)
    w1 = params["w1"].astype(bf16)
    w2 = params["w2"].astype(bf16)
    bkv = jnp.concatenate([params["bk"], params["bv"]], axis=1).astype(jnp.float32)
    # Pack the seven (1, D) vectors into one (7, D) array (one padded tile instead of seven).
    vecs = jnp.concatenate(
        [params["bq"], params["bo"], params["b2"],
         params["g1"], params["be1"], params["g2"], params["be2"]],
        axis=0).astype(jnp.float32)
    b1 = params["b1"].astype(jnp.float32)

    weights = [wq, wkv, wo, w1, w2, bkv, vecs, b1]

    in_specs = [pl.BlockSpec((None, S, D), lambda b, s: (b, 0, 0))]   # full sequence per batch
    in_specs += [_const_spec(w.shape, weight_buffers) for w in weights]

    # --- VMEM limit derived from the actual TPU generation ---------------------------------
    try:
        vmem_cap = int(pltpu.get_tpu_info().vmem_capacity_bytes)
    except Exception:
        vmem_cap = 64 * 2**20            # conservative (v7x per-TC) fallback
    wbuf = 1 if weight_buffers == 1 else 2
    weight_bytes = sum(int(w.size) * w.dtype.itemsize for w in weights)
    act_bytes = 4 * (
        2 * S * D                        # full-sequence x block (double-buffered)
        + S * D                          # (S, 2D) bf16 KV scratch
        + block_s * D                    # attention output slab
        + 2 * block_s * S                # live score/probability buffer (+ headroom)
        + 4 * block_s * D                # q / x1 / residual temporaries
        + 2 * block_s * dim_ff           # FFN intermediate
        + 2 * 2 * block_s * D            # output block, double-buffered
    )
    vmem_request = wbuf * weight_bytes + 2 * act_bytes
    vmem_limit = int(min(int(0.85 * vmem_cap), max(32 * 2**20, vmem_request)))

    # --- cost estimate (advisory): QK^T and PV both counted, KV projection counted once ----
    flops = B * (8 * S * D * D + 4 * S * S * D + 4 * S * D * dim_ff)
    transcendentals = B * nhead * S * S
    bytes_accessed = int(2 * B * S * D * 4 + weight_bytes)

    return pl.pallas_call(
        functools.partial(transformer_block_kernel, nhead=nhead, block_s=block_s),
        out_shape=jax.ShapeDtypeStruct((B, S, D), x.dtype),
        grid_spec=pltpu.PrefetchScalarGridSpec(
            num_scalar_prefetch=0,
            grid=(B, n_s),
            in_specs=in_specs,
            out_specs=pl.BlockSpec((None, block_s, D), lambda b, s: (b, s, 0)),
            scratch_shapes=[
                pltpu.VMEM((S, 2 * D), bf16),            # cached K|V for the current batch
                pltpu.VMEM((block_s, D), jnp.float32),   # per-head attention output slab
            ],
        ),
        compiler_params=pltpu.CompilerParams(
            # batch axis parallel (megacore / 2 TCs on v7x); s axis arbitrary because the
            # KV scratch computed at s==0 is carried across the remaining sequence tiles.
            dimension_semantics=("parallel", "arbitrary"),
            vmem_limit_bytes=vmem_limit,
        ),
        cost_estimate=pl.CostEstimate(
            flops=flops, transcendentals=transcendentals, bytes_accessed=bytes_accessed),
    )(x, *weights)


def init_params(key, d_model, nhead, dim_ff):
    ks = jax.random.split(key, 8)
    std = 0.02

    def w(k, shape):
        return (std * jax.random.normal(k, shape)).astype(jnp.float32)

    return {
        # attention in-projection (pre-transposed: y = x @ W + b)
        "wq": w(ks[0], (d_model, d_model)),
        "wk": w(ks[1], (d_model, d_model)),
        "wv": w(ks[2], (d_model, d_model)),
        "bq": jnp.zeros((1, d_model), jnp.float32),
        "bk": jnp.zeros((1, d_model), jnp.float32),
        "bv": jnp.zeros((1, d_model), jnp.float32),
        # attention out-projection
        "wo": w(ks[3], (d_model, d_model)),
        "bo": jnp.zeros((1, d_model), jnp.float32),
        # FFN
        "w1": w(ks[4], (d_model, dim_ff)),
        "b1": jnp.zeros((1, dim_ff), jnp.float32),
        "w2": w(ks[5], (dim_ff, d_model)),
        "b2": jnp.zeros((1, d_model), jnp.float32),
        # LayerNorms
        "g1": jnp.ones((1, d_model), jnp.float32),
        "be1": jnp.zeros((1, d_model), jnp.float32),
        "g2": jnp.ones((1, d_model), jnp.float32),
        "be2": jnp.zeros((1, d_model), jnp.float32),
    }


def reference_block(x, p, nhead):
    """Pure-JAX f32 reference (PyTorch semantics) for a sanity check."""
    B, S, D = x.shape
    hd = D // nhead
    scale = 1.0 / float(hd) ** 0.5

    def ln(y, g, b, eps=1e-5):
        mu = jnp.mean(y, axis=-1, keepdims=True)
        var = jnp.mean((y - mu) ** 2, axis=-1, keepdims=True)
        return (y - mu) / jnp.sqrt(var + eps) * g + b

    q = x @ p["wq"] + p["bq"]
    k = x @ p["wk"] + p["bk"]
    v = x @ p["wv"] + p["bv"]
    q = q.reshape(B, S, nhead, hd).transpose(0, 2, 1, 3)
    k = k.reshape(B, S, nhead, hd).transpose(0, 2, 1, 3)
    v = v.reshape(B, S, nhead, hd).transpose(0, 2, 1, 3)
    s = jnp.einsum("bhqd,bhkd->bhqk", q, k) * scale
    a = jnp.einsum("bhqk,bhkd->bhqd", jax.nn.softmax(s, axis=-1), v)
    a = a.transpose(0, 2, 1, 3).reshape(B, S, D) @ p["wo"] + p["bo"]
    x1 = ln(x + a, p["g1"], p["be1"])
    ff = jnp.maximum(x1 @ p["w1"] + p["b1"], 0.0) @ p["w2"] + p["b2"]
    return ln(x1 + ff, p["g2"], p["be2"])


if __name__ == "__main__":
    B, S, d_model, nhead, dim_ff = 2, 16, 32, 4, 64

    key = jax.random.PRNGKey(0)
    kx, kp = jax.random.split(key)
    x = jax.random.normal(kx, (B, S, d_model), dtype=jnp.float32)
    params = init_params(kp, d_model, nhead, dim_ff)

    try:
        out = jax.block_until_ready(
            transformer_block(x, params, nhead, block_s=8, weight_buffers=1))
    except Exception:
        # Fallback for JAX versions without BlockSpec(pipeline_mode=pl.Buffered(1)):
        # identical kernel, default (double-buffered) weight pipelining.
        out = jax.block_until_ready(
            transformer_block(x, params, nhead, block_s=8, weight_buffers=None))

    ref = reference_block(x, params, nhead)
    assert out.shape == (B, S, d_model)
    # Kernel uses bf16 MXU inputs (f32 accumulation) + approx softmax reciprocal, so compare
    # against the f32 reference with a bf16-appropriate tolerance.
    assert jnp.allclose(out, ref, atol=2e-2, rtol=2e-2), "mismatch vs reference"

    print("KERNEL_OK")
</pallas_src>

<mosaic_0001>
module attributes {stable_mosaic.version = 11 : i64} {
  func.func @transformer_block_kernel(%arg0: i32, %arg1: i32, %arg2: memref<1x16x32xf32, #tpu.memory_space<vmem>>, %arg3: memref<32x32xbf16, #tpu.memory_space<vmem>>, %arg4: memref<32x64xbf16, #tpu.memory_space<vmem>>, %arg5: memref<32x32xbf16, #tpu.memory_space<vmem>>, %arg6: memref<32x64xbf16, #tpu.memory_space<vmem>>, %arg7: memref<64x32xbf16, #tpu.memory_space<vmem>>, %arg8: memref<1x64xf32, #tpu.memory_space<vmem>>, %arg9: memref<7x32xf32, #tpu.memory_space<vmem>>, %arg10: memref<1x64xf32, #tpu.memory_space<vmem>>, %arg11: memref<1x8x32xf32, #tpu.memory_space<vmem>>, %arg12: memref<16x64xbf16, #tpu.memory_space<vmem>>, %arg13: memref<8x32xf32, #tpu.memory_space<vmem>>) attributes {dimension_semantics = [#tpu.dimension_semantics<parallel>, #tpu.dimension_semantics<arbitrary>], iteration_bounds = array<i64: 2, 2>, scalar_prefetch = 0 : i64, scratch_operands = 2 : i64, tpu.core_type = #tpu.core_type<tc>, window_params = [{transform_indices = @transform_0, window_bounds = array<i64: 1, 16, 32>}, {pipeline_mode = #tpu.pipeline_mode<synchronous>, transform_indices = @transform_1, window_bounds = array<i64: 32, 32>}, {pipeline_mode = #tpu.pipeline_mode<synchronous>, transform_indices = @transform_2, window_bounds = array<i64: 32, 64>}, {pipeline_mode = #tpu.pipeline_mode<synchronous>, transform_indices = @transform_3, window_bounds = array<i64: 32, 32>}, {pipeline_mode = #tpu.pipeline_mode<synchronous>, transform_indices = @transform_4, window_bounds = array<i64: 32, 64>}, {pipeline_mode = #tpu.pipeline_mode<synchronous>, transform_indices = @transform_5, window_bounds = array<i64: 64, 32>}, {pipeline_mode = #tpu.pipeline_mode<synchronous>, transform_indices = @transform_6, window_bounds = array<i64: 1, 64>}, {pipeline_mode = #tpu.pipeline_mode<synchronous>, transform_indices = @transform_7, window_bounds = array<i64: 7, 32>}, {pipeline_mode = #tpu.pipeline_mode<synchronous>, transform_indices = @transform_8, window_bounds = array<i64: 1, 64>}, {transform_indices = @transform_9, window_bounds = array<i64: 1, 8, 32>}]} {
    %c0_i32 = arith.constant 0 : i32
    %0 = arith.cmpi eq, %arg1, %c0_i32 : i32
    %1 = arith.extui %0 : i1 to i32
    %c0_i32_0 = arith.constant 0 : i32
    %2 = arith.cmpi ne, %1, %c0_i32_0 : i32
    scf.if %2 {
      %c0_76 = arith.constant 0 : index
      %c0_77 = arith.constant 0 : index
      %c0_78 = arith.constant 0 : index
      %161 = vector.load %arg2[%c0_76, %c0_77, %c0_78] : memref<1x16x32xf32, #tpu.memory_space<vmem>>, vector<1x16x32xf32>
      %162 = vector.shape_cast %161 : vector<1x16x32xf32> to vector<16x32xf32>
      %163 = arith.truncf %162 : vector<16x32xf32> to vector<16x32xbf16>
      %c0_79 = arith.constant 0 : index
      %c0_80 = arith.constant 0 : index
      %164 = vector.load %arg4[%c0_79, %c0_80] : memref<32x64xbf16, #tpu.memory_space<vmem>>, vector<32x64xbf16>
      %cst_81 = arith.constant dense<0.000000e+00> : vector<16x64xf32>
      %165 = tpu.matmul %163, %164, %cst_81 {dimension_numbers = #tpu.dot_dimension_numbers<[1], [0], [0], [1], [0, 0, 1, 1], [], []>} : vector<16x32xbf16>, vector<32x64xbf16>, vector<16x64xf32> -> vector<16x64xf32>
      %c0_82 = arith.constant 0 : index
      %c0_83 = arith.constant 0 : index
      %166 = vector.load %arg8[%c0_82, %c0_83] : memref<1x64xf32, #tpu.memory_space<vmem>>, vector<1x64xf32>
      %167 = vector.broadcast %166 : vector<1x64xf32> to vector<16x64xf32>
      %168 = arith.addf %165, %167 : vector<16x64xf32>
      %169 = arith.truncf %168 : vector<16x64xf32> to vector<16x64xbf16>
      %c0_84 = arith.constant 0 : index
      %c0_85 = arith.constant 0 : index
      %170 = vector.load %arg12[%c0_84, %c0_85] : memref<16x64xbf16, #tpu.memory_space<vmem>>, vector<16x64xbf16>
      tpu.vector_store %arg12[%c0_84, %c0_85], %169 {strides = array<i32>} : memref<16x64xbf16, #tpu.memory_space<vmem>>, vector<16x64xbf16>,
    } else {
    }
    %c8_i32 = arith.constant 8 : i32
    %3 = arith.muli %arg1, %c8_i32 : i32
    %4 = tpu.assume_multiple %3, 8 : i32
    %c0 = arith.constant 0 : index
    %5 = arith.index_cast %4 : i32 to index
    %c0_1 = arith.constant 0 : index
    %6 = vector.load %arg2[%c0, %5, %c0_1] : memref<1x16x32xf32, #tpu.memory_space<vmem>>, vector<1x8x32xf32>
    %7 = vector.shape_cast %6 : vector<1x8x32xf32> to vector<8x32xf32>
    %8 = arith.truncf %7 : vector<8x32xf32> to vector<8x32xbf16>
    %c0_2 = arith.constant 0 : index
    %c0_3 = arith.constant 0 : index
    %9 = vector.load %arg9[%c0_2, %c0_3] : memref<7x32xf32, #tpu.memory_space<vmem>>, vector<1x32xf32>
    %c1 = arith.constant 1 : index
    %c0_4 = arith.constant 0 : index
    %10 = vector.load %arg9[%c1, %c0_4] : memref<7x32xf32, #tpu.memory_space<vmem>>, vector<1x32xf32>
    %c2 = arith.constant 2 : index
    %c0_5 = arith.constant 0 : index
    %11 = vector.load %arg9[%c2, %c0_5] : memref<7x32xf32, #tpu.memory_space<vmem>>, vector<1x32xf32>
    %c3 = arith.constant 3 : index
    %c0_6 = arith.constant 0 : index
    %12 = vector.load %arg9[%c3, %c0_6] : memref<7x32xf32, #tpu.memory_space<vmem>>, vector<1x32xf32>
    %c4 = arith.constant 4 : index
    %c0_7 = arith.constant 0 : index
    %13 = vector.load %arg9[%c4, %c0_7] : memref<7x32xf32, #tpu.memory_space<vmem>>, vector<1x32xf32>
    %c5 = arith.constant 5 : index
    %c0_8 = arith.constant 0 : index
    %14 = vector.load %arg9[%c5, %c0_8] : memref<7x32xf32, #tpu.memory_space<vmem>>, vector<1x32xf32>
    %c6 = arith.constant 6 : index
    %c0_9 = arith.constant 0 : index
    %15 = vector.load %arg9[%c6, %c0_9] : memref<7x32xf32, #tpu.memory_space<vmem>>, vector<1x32xf32>
    %c0_10 = arith.constant 0 : index
    %c0_11 = arith.constant 0 : index
    %16 = vector.load %arg3[%c0_10, %c0_11] : memref<32x32xbf16, #tpu.memory_space<vmem>>, vector<32x32xbf16>
    %cst = arith.constant dense<0.000000e+00> : vector<8x32xf32>
    %17 = tpu.matmul %8, %16, %cst {dimension_numbers = #tpu.dot_dimension_numbers<[1], [0], [0], [1], [0, 0, 1, 1], [], []>} : vector<8x32xbf16>, vector<32x32xbf16>, vector<8x32xf32> -> vector<8x32xf32>
    %18 = vector.broadcast %9 : vector<1x32xf32> to vector<8x32xf32>
    %19 = arith.addf %17, %18 : vector<8x32xf32>
    %20 = arith.truncf %19 : vector<8x32xf32> to vector<8x32xbf16>
    %c0_12 = arith.constant 0 : index
    %c0_13 = arith.constant 0 : index
    %21 = vector.load %arg12[%c0_12, %c0_13] : memref<16x64xbf16, #tpu.memory_space<vmem>>, vector<16x8xbf16>
    %c0_14 = arith.constant 0 : index
    %c32 = arith.constant 32 : index
    %22 = vector.load %arg12[%c0_14, %c32] : memref<16x64xbf16, #tpu.memory_space<vmem>>, vector<16x8xbf16>
    %23 = vector.extract_strided_slice %20 {offsets = [0, 0], sizes = [8, 8], strides = [1, 1]} : vector<8x32xbf16> to vector<8x8xbf16>
    %cst_15 = arith.constant dense<0.000000e+00> : vector<8x16xf32>
    %24 = tpu.matmul %23, %21, %cst_15 {dimension_numbers = #tpu.dot_dimension_numbers<[1], [1], [0], [0], [0, 0, 1, 0], [], []>} : vector<8x8xbf16>, vector<16x8xbf16>, vector<8x16xf32> -> vector<8x16xf32>
    %cst_16 = arith.constant 0.353553385 : f32
    %25 = vector.broadcast %cst_16 : f32 to vector<8x16xf32>
    %26 = arith.mulf %24, %25 : vector<8x16xf32>
    %cst_17 = arith.constant dense<0xFF800000> : vector<8xf32>
    %27 = vector.multi_reduction <maximumf>, %26, %cst_17 [1] : vector<8x16xf32> to vector<8xf32>
    %28 = vector.shape_cast %27 : vector<8xf32> to vector<8x1xf32>
    %29 = vector.broadcast %28 : vector<8x1xf32> to vector<8x16xf32>
    %30 = arith.subf %26, %29 : vector<8x16xf32>
    %31 = math.exp %30 : vector<8x16xf32>
    %cst_18 = arith.constant dense<0.000000e+00> : vector<8xf32>
    %32 = vector.multi_reduction <add>, %31, %cst_18 [1] : vector<8x16xf32> to vector<8xf32>
    %33 = vector.shape_cast %32 : vector<8xf32> to vector<8x1xf32>
    %34 = tpu.reciprocal %33 {approx = true} : vector<8x1xf32> -> vector<8x1xf32>
    %35 = vector.broadcast %34 : vector<8x1xf32> to vector<8x16xf32>
    %36 = arith.mulf %31, %35 : vector<8x16xf32>
    %37 = arith.truncf %36 : vector<8x16xf32> to vector<8x16xbf16>
    %cst_19 = arith.constant dense<0.000000e+00> : vector<8x8xf32>
    %38 = tpu.matmul %37, %22, %cst_19 {dimension_numbers = #tpu.dot_dimension_numbers<[1], [0], [0], [1], [0, 0, 1, 1], [], []>} : vector<8x16xbf16>, vector<16x8xbf16>, vector<8x8xf32> -> vector<8x8xf32>
    %c0_20 = arith.constant 0 : index
    %c0_21 = arith.constant 0 : index
    %39 = vector.load %arg13[%c0_20, %c0_21] : memref<8x32xf32, #tpu.memory_space<vmem>>, vector<8x8xf32>
    tpu.vector_store %arg13[%c0_20, %c0_21], %38 {strides = array<i32>} : memref<8x32xf32, #tpu.memory_space<vmem>>, vector<8x8xf32>,
    %c0_22 = arith.constant 0 : index
    %c8 = arith.constant 8 : index
    %40 = vector.load %arg12[%c0_22, %c8] : memref<16x64xbf16, #tpu.memory_space<vmem>>, vector<16x8xbf16>
    %c0_23 = arith.constant 0 : index
    %c40 = arith.constant 40 : index
    %41 = vector.load %arg12[%c0_23, %c40] : memref<16x64xbf16, #tpu.memory_space<vmem>>, vector<16x8xbf16>
    %42 = vector.extract_strided_slice %20 {offsets = [0, 8], sizes = [8, 8], strides = [1, 1]} : vector<8x32xbf16> to vector<8x8xbf16>
    %cst_24 = arith.constant dense<0.000000e+00> : vector<8x16xf32>
    %43 = tpu.matmul %42, %40, %cst_24 {dimension_numbers = #tpu.dot_dimension_numbers<[1], [1], [0], [0], [0, 0, 1, 0], [], []>} : vector<8x8xbf16>, vector<16x8xbf16>, vector<8x16xf32> -> vector<8x16xf32>
    %cst_25 = arith.constant 0.353553385 : f32
    %44 = vector.broadcast %cst_25 : f32 to vector<8x16xf32>
    %45 = arith.mulf %43, %44 : vector<8x16xf32>
    %cst_26 = arith.constant dense<0xFF800000> : vector<8xf32>
    %46 = vector.multi_reduction <maximumf>, %45, %cst_26 [1] : vector<8x16xf32> to vector<8xf32>
    %47 = vector.shape_cast %46 : vector<8xf32> to vector<8x1xf32>
    %48 = vector.broadcast %47 : vector<8x1xf32> to vector<8x16xf32>
    %49 = arith.subf %45, %48 : vector<8x16xf32>
    %50 = math.exp %49 : vector<8x16xf32>
    %cst_27 = arith.constant dense<0.000000e+00> : vector<8xf32>
    %51 = vector.multi_reduction <add>, %50, %cst_27 [1] : vector<8x16xf32> to vector<8xf32>
    %52 = vector.shape_cast %51 : vector<8xf32> to vector<8x1xf32>
    %53 = tpu.reciprocal %52 {approx = true} : vector<8x1xf32> -> vector<8x1xf32>
    %54 = vector.broadcast %53 : vector<8x1xf32> to vector<8x16xf32>
    %55 = arith.mulf %50, %54 : vector<8x16xf32>
    %56 = arith.truncf %55 : vector<8x16xf32> to vector<8x16xbf16>
    %cst_28 = arith.constant dense<0.000000e+00> : vector<8x8xf32>
    %57 = tpu.matmul %56, %41, %cst_28 {dimension_numbers = #tpu.dot_dimension_numbers<[1], [0], [0], [1], [0, 0, 1, 1], [], []>} : vector<8x16xbf16>, vector<16x8xbf16>, vector<8x8xf32> -> vector<8x8xf32>
    %c0_29 = arith.constant 0 : index
    %c8_30 = arith.constant 8 : index
    %58 = vector.load %arg13[%c0_29, %c8_30] : memref<8x32xf32, #tpu.memory_space<vmem>>, vector<8x8xf32>
    tpu.vector_store %arg13[%c0_29, %c8_30], %57 {strides = array<i32>} : memref<8x32xf32, #tpu.memory_space<vmem>>, vector<8x8xf32>,
    %c0_31 = arith.constant 0 : index
    %c16 = arith.constant 16 : index
    %59 = vector.load %arg12[%c0_31, %c16] : memref<16x64xbf16, #tpu.memory_space<vmem>>, vector<16x8xbf16>
    %c0_32 = arith.constant 0 : index
    %c48 = arith.constant 48 : index
    %60 = vector.load %arg12[%c0_32, %c48] : memref<16x64xbf16, #tpu.memory_space<vmem>>, vector<16x8xbf16>
    %61 = vector.extract_strided_slice %20 {offsets = [0, 16], sizes = [8, 8], strides = [1, 1]} : vector<8x32xbf16> to vector<8x8xbf16>
    %cst_33 = arith.constant dense<0.000000e+00> : vector<8x16xf32>
    %62 = tpu.matmul %61, %59, %cst_33 {dimension_numbers = #tpu.dot_dimension_numbers<[1], [1], [0], [0], [0, 0, 1, 0], [], []>} : vector<8x8xbf16>, vector<16x8xbf16>, vector<8x16xf32> -> vector<8x16xf32>
    %cst_34 = arith.constant 0.353553385 : f32
    %63 = vector.broadcast %cst_34 : f32 to vector<8x16xf32>
    %64 = arith.mulf %62, %63 : vector<8x16xf32>
    %cst_35 = arith.constant dense<0xFF800000> : vector<8xf32>
    %65 = vector.multi_reduction <maximumf>, %64, %cst_35 [1] : vector<8x16xf32> to vector<8xf32>
    %66 = vector.shape_cast %65 : vector<8xf32> to vector<8x1xf32>
    %67 = vector.broadcast %66 : vector<8x1xf32> to vector<8x16xf32>
    %68 = arith.subf %64, %67 : vector<8x16xf32>
    %69 = math.exp %68 : vector<8x16xf32>
    %cst_36 = arith.constant dense<0.000000e+00> : vector<8xf32>
    %70 = vector.multi_reduction <add>, %69, %cst_36 [1] : vector<8x16xf32> to vector<8xf32>
    %71 = vector.shape_cast %70 : vector<8xf32> to vector<8x1xf32>
    %72 = tpu.reciprocal %71 {approx = true} : vector<8x1xf32> -> vector<8x1xf32>
    %73 = vector.broadcast %72 : vector<8x1xf32> to vector<8x16xf32>
    %74 = arith.mulf %69, %73 : vector<8x16xf32>
    %75 = arith.truncf %74 : vector<8x16xf32> to vector<8x16xbf16>
    %cst_37 = arith.constant dense<0.000000e+00> : vector<8x8xf32>
    %76 = tpu.matmul %75, %60, %cst_37 {dimension_numbers = #tpu.dot_dimension_numbers<[1], [0], [0], [1], [0, 0, 1, 1], [], []>} : vector<8x16xbf16>, vector<16x8xbf16>, vector<8x8xf32> -> vector<8x8xf32>
    %c0_38 = arith.constant 0 : index
    %c16_39 = arith.constant 16 : index
    %77 = vector.load %arg13[%c0_38, %c16_39] : memref<8x32xf32, #tpu.memory_space<vmem>>, vector<8x8xf32>
    tpu.vector_store %arg13[%c0_38, %c16_39], %76 {strides = array<i32>} : memref<8x32xf32, #tpu.memory_space<vmem>>, vector<8x8xf32>,
    %c0_40 = arith.constant 0 : index
    %c24 = arith.constant 24 : index
    %78 = vector.load %arg12[%c0_40, %c24] : memref<16x64xbf16, #tpu.memory_space<vmem>>, vector<16x8xbf16>
    %c0_41 = arith.constant 0 : index
    %c56 = arith.constant 56 : index
    %79 = vector.load %arg12[%c0_41, %c56] : memref<16x64xbf16, #tpu.memory_space<vmem>>, vector<16x8xbf16>
    %80 = vector.extract_strided_slice %20 {offsets = [0, 24], sizes = [8, 8], strides = [1, 1]} : vector<8x32xbf16> to vector<8x8xbf16>
    %cst_42 = arith.constant dense<0.000000e+00> : vector<8x16xf32>
    %81 = tpu.matmul %80, %78, %cst_42 {dimension_numbers = #tpu.dot_dimension_numbers<[1], [1], [0], [0], [0, 0, 1, 0], [], []>} : vector<8x8xbf16>, vector<16x8xbf16>, vector<8x16xf32> -> vector<8x16xf32>
    %cst_43 = arith.constant 0.353553385 : f32
    %82 = vector.broadcast %cst_43 : f32 to vector<8x16xf32>
    %83 = arith.mulf %81, %82 : vector<8x16xf32>
    %cst_44 = arith.constant dense<0xFF800000> : vector<8xf32>
    %84 = vector.multi_reduction <maximumf>, %83, %cst_44 [1] : vector<8x16xf32> to vector<8xf32>
    %85 = vector.shape_cast %84 : vector<8xf32> to vector<8x1xf32>
    %86 = vector.broadcast %85 : vector<8x1xf32> to vector<8x16xf32>
    %87 = arith.subf %83, %86 : vector<8x16xf32>
    %88 = math.exp %87 : vector<8x16xf32>
    %cst_45 = arith.constant dense<0.000000e+00> : vector<8xf32>
    %89 = vector.multi_reduction <add>, %88, %cst_45 [1] : vector<8x16xf32> to vector<8xf32>
    %90 = vector.shape_cast %89 : vector<8xf32> to vector<8x1xf32>
    %91 = tpu.reciprocal %90 {approx = true} : vector<8x1xf32> -> vector<8x1xf32>
    %92 = vector.broadcast %91 : vector<8x1xf32> to vector<8x16xf32>
    %93 = arith.mulf %88, %92 : vector<8x16xf32>
    %94 = arith.truncf %93 : vector<8x16xf32> to vector<8x16xbf16>
    %cst_46 = arith.constant dense<0.000000e+00> : vector<8x8xf32>
    %95 = tpu.matmul %94, %79, %cst_46 {dimension_numbers = #tpu.dot_dimension_numbers<[1], [0], [0], [1], [0, 0, 1, 1], [], []>} : vector<8x16xbf16>, vector<16x8xbf16>, vector<8x8xf32> -> vector<8x8xf32>
    %c0_47 = arith.constant 0 : index
    %c24_48 = arith.constant 24 : index
    %96 = vector.load %arg13[%c0_47, %c24_48] : memref<8x32xf32, #tpu.memory_space<vmem>>, vector<8x8xf32>
    tpu.vector_store %arg13[%c0_47, %c24_48], %95 {strides = array<i32>} : memref<8x32xf32, #tpu.memory_space<vmem>>, vector<8x8xf32>,
    %c0_49 = arith.constant 0 : index
    %c0_50 = arith.constant 0 : index
    %97 = vector.load %arg13[%c0_49, %c0_50] : memref<8x32xf32, #tpu.memory_space<vmem>>, vector<8x32xf32>
    %98 = arith.truncf %97 : vector<8x32xf32> to vector<8x32xbf16>
    %c0_51 = arith.constant 0 : index
    %c0_52 = arith.constant 0 : index
    %99 = vector.load %arg5[%c0_51, %c0_52] : memref<32x32xbf16, #tpu.memory_space<vmem>>, vector<32x32xbf16>
    %cst_53 = arith.constant dense<0.000000e+00> : vector<8x32xf32>
    %100 = tpu.matmul %98, %99, %cst_53 {dimension_numbers = #tpu.dot_dimension_numbers<[1], [0], [0], [1], [0, 0, 1, 1], [], []>} : vector<8x32xbf16>, vector<32x32xbf16>, vector<8x32xf32> -> vector<8x32xf32>
    %101 = vector.broadcast %10 : vector<1x32xf32> to vector<8x32xf32>
    %102 = arith.addf %100, %101 : vector<8x32xf32>
    %103 = arith.addf %7, %102 : vector<8x32xf32>
    %cst_54 = arith.constant dense<0.000000e+00> : vector<8xf32>
    %104 = vector.multi_reduction <add>, %103, %cst_54 [1] : vector<8x32xf32> to vector<8xf32>
    %105 = vector.shape_cast %104 : vector<8xf32> to vector<8x1xf32>
    %cst_55 = arith.constant 3.200000e+01 : f32
    %106 = vector.broadcast %cst_55 : f32 to vector<8x1xf32>
    %107 = arith.divf %105, %106 : vector<8x1xf32>
    %108 = vector.broadcast %107 : vector<8x1xf32> to vector<8x32xf32>
    %109 = arith.subf %103, %108 : vector<8x32xf32>
    %110 = arith.mulf %109, %109 : vector<8x32xf32>
    %cst_56 = arith.constant dense<0.000000e+00> : vector<8xf32>
    %111 = vector.multi_reduction <add>, %110, %cst_56 [1] : vector<8x32xf32> to vector<8xf32>
    %112 = vector.shape_cast %111 : vector<8xf32> to vector<8x1xf32>
    %cst_57 = arith.constant 3.200000e+01 : f32
    %113 = vector.broadcast %cst_57 : f32 to vector<8x1xf32>
    %114 = arith.divf %112, %113 : vector<8x1xf32>
    %cst_58 = arith.constant 9.99999974E-6 : f32
    %115 = vector.broadcast %cst_58 : f32 to vector<8x1xf32>
    %116 = arith.addf %114, %115 : vector<8x1xf32>
    %117 = math.rsqrt %116 : vector<8x1xf32>
    %118 = vector.broadcast %117 : vector<8x1xf32> to vector<8x32xf32>
    %119 = arith.mulf %109, %118 : vector<8x32xf32>
    %120 = vector.broadcast %12 : vector<1x32xf32> to vector<8x32xf32>
    %121 = arith.mulf %119, %120 : vector<8x32xf32>
    %122 = vector.broadcast %13 : vector<1x32xf32> to vector<8x32xf32>
    %123 = arith.addf %121, %122 : vector<8x32xf32>
    %124 = arith.truncf %123 : vector<8x32xf32> to vector<8x32xbf16>
    %c0_59 = arith.constant 0 : index
    %c0_60 = arith.constant 0 : index
    %125 = vector.load %arg6[%c0_59, %c0_60] : memref<32x64xbf16, #tpu.memory_space<vmem>>, vector<32x64xbf16>
    %cst_61 = arith.constant dense<0.000000e+00> : vector<8x64xf32>
    %126 = tpu.matmul %124, %125, %cst_61 {dimension_numbers = #tpu.dot_dimension_numbers<[1], [0], [0], [1], [0, 0, 1, 1], [], []>} : vector<8x32xbf16>, vector<32x64xbf16>, vector<8x64xf32> -> vector<8x64xf32>
    %c0_62 = arith.constant 0 : index
    %c0_63 = arith.constant 0 : index
    %127 = vector.load %arg10[%c0_62, %c0_63] : memref<1x64xf32, #tpu.memory_space<vmem>>, vector<1x64xf32>
    %128 = vector.broadcast %127 : vector<1x64xf32> to vector<8x64xf32>
    %129 = arith.addf %126, %128 : vector<8x64xf32>
    %cst_64 = arith.constant 0.000000e+00 : f32
    %130 = vector.broadcast %cst_64 : f32 to vector<8x64xf32>
    %131 = arith.maximumf %129, %130 : vector<8x64xf32>
    %132 = arith.truncf %131 : vector<8x64xf32> to vector<8x64xbf16>
    %c0_65 = arith.constant 0 : index
    %c0_66 = arith.constant 0 : index
    %133 = vector.load %arg7[%c0_65, %c0_66] : memref<64x32xbf16, #tpu.memory_space<vmem>>, vector<64x32xbf16>
    %cst_67 = arith.constant dense<0.000000e+00> : vector<8x32xf32>
    %134 = tpu.matmul %132, %133, %cst_67 {dimension_numbers = #tpu.dot_dimension_numbers<[1], [0], [0], [1], [0, 0, 1, 1], [], []>} : vector<8x64xbf16>, vector<64x32xbf16>, vector<8x32xf32> -> vector<8x32xf32>
    %135 = vector.broadcast %11 : vector<1x32xf32> to vector<8x32xf32>
    %136 = arith.addf %134, %135 : vector<8x32xf32>
    %137 = arith.addf %123, %136 : vector<8x32xf32>
    %cst_68 = arith.constant dense<0.000000e+00> : vector<8xf32>
    %138 = vector.multi_reduction <add>, %137, %cst_68 [1] : vector<8x32xf32> to vector<8xf32>
    %139 = vector.shape_cast %138 : vector<8xf32> to vector<8x1xf32>
    %cst_69 = arith.constant 3.200000e+01 : f32
    %140 = vector.broadcast %cst_69 : f32 to vector<8x1xf32>
    %141 = arith.divf %139, %140 : vector<8x1xf32>
    %142 = vector.broadcast %141 : vector<8x1xf32> to vector<8x32xf32>
    %143 = arith.subf %137, %142 : vector<8x32xf32>
    %144 = arith.mulf %143, %143 : vector<8x32xf32>
    %cst_70 = arith.constant dense<0.000000e+00> : vector<8xf32>
    %145 = vector.multi_reduction <add>, %144, %cst_70 [1] : vector<8x32xf32> to vector<8xf32>
    %146 = vector.shape_cast %145 : vector<8xf32> to vector<8x1xf32>
    %cst_71 = arith.constant 3.200000e+01 : f32
    %147 = vector.broadcast %cst_71 : f32 to vector<8x1xf32>
    %148 = arith.divf %146, %147 : vector<8x1xf32>
    %cst_72 = arith.constant 9.99999974E-6 : f32
    %149 = vector.broadcast %cst_72 : f32 to vector<8x1xf32>
    %150 = arith.addf %148, %149 : vector<8x1xf32>
    %151 = math.rsqrt %150 : vector<8x1xf32>
    %152 = vector.broadcast %151 : vector<8x1xf32> to vector<8x32xf32>
    %153 = arith.mulf %143, %152 : vector<8x32xf32>
    %154 = vector.broadcast %14 : vector<1x32xf32> to vector<8x32xf32>
    %155 = arith.mulf %153, %154 : vector<8x32xf32>
    %156 = vector.broadcast %15 : vector<1x32xf32> to vector<8x32xf32>
    %157 = arith.addf %155, %156 : vector<8x32xf32>
    %c0_73 = arith.constant 0 : index
    %c0_74 = arith.constant 0 : index
    %c0_75 = arith.constant 0 : index
    %158 = vector.load %arg11[%c0_73, %c0_74, %c0_75] : memref<1x8x32xf32, #tpu.memory_space<vmem>>, vector<1x8x32xf32>
    %159 = vector.shape_cast %158 : vector<1x8x32xf32> to vector<8x32xf32>
    %160 = vector.shape_cast %157 : vector<8x32xf32> to vector<1x8x32xf32>
    tpu.vector_store %arg11[%c0_73, %c0_74, %c0_75], %160 {strides = array<i32>} : memref<1x8x32xf32, #tpu.memory_space<vmem>>, vector<1x8x32xf32>,
    return
  }
  func.func @transform_0(%arg0: i32, %arg1: i32) -> (i32, i32, i32) {
    %c0_i32 = arith.constant 0 : i32
    %c0_i32_0 = arith.constant 0 : i32
    %c0_i32_1 = arith.constant 0 : i32
    return %arg0, %c0_i32, %c0_i32_0 : i32, i32, i32
  }
  func.func @transform_1(%arg0: i32, %arg1: i32) -> (i32, i32) {
    %c0_i32 = arith.constant 0 : i32
    %c0_i32_0 = arith.constant 0 : i32
    %c0_i32_1 = arith.constant 0 : i32
    return %c0_i32, %c0_i32_0 : i32, i32
  }
  func.func @transform_2(%arg0: i32, %arg1: i32) -> (i32, i32) {
    %c0_i32 = arith.constant 0 : i32
    %c0_i32_0 = arith.constant 0 : i32
    %c0_i32_1 = arith.constant 0 : i32
    return %c0_i32, %c0_i32_0 : i32, i32
  }
  func.func @transform_3(%arg0: i32, %arg1: i32) -> (i32, i32) {
    %c0_i32 = arith.constant 0 : i32
    %c0_i32_0 = arith.constant 0 : i32
    %c0_i32_1 = arith.constant 0 : i32
    return %c0_i32, %c0_i32_0 : i32, i32
  }
  func.func @transform_4(%arg0: i32, %arg1: i32) -> (i32, i32) {
    %c0_i32 = arith.constant 0 : i32
    %c0_i32_0 = arith.constant 0 : i32
    %c0_i32_1 = arith.constant 0 : i32
    return %c0_i32, %c0_i32_0 : i32, i32
  }
  func.func @transform_5(%arg0: i32, %arg1: i32) -> (i32, i32) {
    %c0_i32 = arith.constant 0 : i32
    %c0_i32_0 = arith.constant 0 : i32
    %c0_i32_1 = arith.constant 0 : i32
    return %c0_i32, %c0_i32_0 : i32, i32
  }
  func.func @transform_6(%arg0: i32, %arg1: i32) -> (i32, i32) {
    %c0_i32 = arith.constant 0 : i32
    %c0_i32_0 = arith.constant 0 : i32
    %c0_i32_1 = arith.constant 0 : i32
    return %c0_i32, %c0_i32_0 : i32, i32
  }
  func.func @transform_7(%arg0: i32, %arg1: i32) -> (i32, i32) {
    %c0_i32 = arith.constant 0 : i32
    %c0_i32_0 = arith.constant 0 : i32
    %c0_i32_1 = arith.constant 0 : i32
    return %c0_i32, %c0_i32_0 : i32, i32
  }
  func.func @transform_8(%arg0: i32, %arg1: i32) -> (i32, i32) {
    %c0_i32 = arith.constant 0 : i32
    %c0_i32_0 = arith.constant 0 : i32
    %c0_i32_1 = arith.constant 0 : i32
    return %c0_i32, %c0_i32_0 : i32, i32
  }
  func.func @transform_9(%arg0: i32, %arg1: i32) -> (i32, i32, i32) {
    %c0_i32 = arith.constant 0 : i32
    %c0_i32_0 = arith.constant 0 : i32
    return %arg0, %arg1, %c0_i32 : i32, i32, i32
  }
}

module attributes {stable_mosaic.version = 11 : i64} {
  func.func @transformer_block_kernel(%arg0: i32, %arg1: i32, %arg2: memref<1x16x32xf32, #tpu.memory_space<vmem>>, %arg3: memref<32x32xbf16, #tpu.memory_space<vmem>>, %arg4: memref<32x64xbf16, #tpu.memory_space<vmem>>, %arg5: memref<32x32xbf16, #tpu.memory_space<vmem>>, %arg6: memref<32x64xbf16, #tpu.memory_space<vmem>>, %arg7: memref<64x32xbf16, #tpu.memory_space<vmem>>, %arg8: memref<1x64xf32, #tpu.memory_space<vmem>>, %arg9: memref<7x32xf32, #tpu.memory_space<vmem>>, %arg10: memref<1x64xf32, #tpu.memory_space<vmem>>, %arg11: memref<1x8x32xf32, #tpu.memory_space<vmem>>, %arg12: memref<16x64xbf16, #tpu.memory_space<vmem>>, %arg13: memref<8x32xf32, #tpu.memory_space<vmem>>) attributes {dimension_semantics = [#tpu.dimension_semantics<parallel>, #tpu.dimension_semantics<arbitrary>], iteration_bounds = array<i64: 2, 2>, scalar_prefetch = 0 : i64, scratch_operands = 2 : i64, tpu.core_type = #tpu.core_type<tc>, window_params = [{transform_indices = @transform_0, window_bounds = array<i64: 1, 16, 32>}, {pipeline_mode = #tpu.pipeline_mode<synchronous>, transform_indices = @transform_1, window_bounds = array<i64: 32, 32>}, {pipeline_mode = #tpu.pipeline_mode<synchronous>, transform_indices = @transform_2, window_bounds = array<i64: 32, 64>}, {pipeline_mode = #tpu.pipeline_mode<synchronous>, transform_indices = @transform_3, window_bounds = array<i64: 32, 32>}, {pipeline_mode = #tpu.pipeline_mode<synchronous>, transform_indices = @transform_4, window_bounds = array<i64: 32, 64>}, {pipeline_mode = #tpu.pipeline_mode<synchronous>, transform_indices = @transform_5, window_bounds = array<i64: 64, 32>}, {pipeline_mode = #tpu.pipeline_mode<synchronous>, transform_indices = @transform_6, window_bounds = array<i64: 1, 64>}, {pipeline_mode = #tpu.pipeline_mode<synchronous>, transform_indices = @transform_7, window_bounds = array<i64: 7, 32>}, {pipeline_mode = #tpu.pipeline_mode<synchronous>, transform_indices = @transform_8, window_bounds = array<i64: 1, 64>}, {transform_indices = @transform_9, window_bounds = array<i64: 1, 8, 32>}]} {
    %c0_i32 = arith.constant 0 : i32
    %0 = arith.cmpi eq, %arg1, %c0_i32 : i32
    %1 = arith.extui %0 : i1 to i32
    %c0_i32_0 = arith.constant 0 : i32
    %2 = arith.cmpi ne, %1, %c0_i32_0 : i32
    scf.if %2 {
      %c0_76 = arith.constant 0 : index
      %c0_77 = arith.constant 0 : index
      %c0_78 = arith.constant 0 : index
      %161 = vector.load %arg2[%c0_76, %c0_77, %c0_78] : memref<1x16x32xf32, #tpu.memory_space<vmem>>, vector<1x16x32xf32>
      %162 = vector.shape_cast %161 : vector<1x16x32xf32> to vector<16x32xf32>
      %163 = arith.truncf %162 : vector<16x32xf32> to vector<16x32xbf16>
      %c0_79 = arith.constant 0 : index
      %c0_80 = arith.constant 0 : index
      %164 = vector.load %arg4[%c0_79, %c0_80] : memref<32x64xbf16, #tpu.memory_space<vmem>>, vector<32x64xbf16>
      %cst_81 = arith.constant dense<0.000000e+00> : vector<16x64xf32>
      %165 = tpu.matmul %163, %164, %cst_81 {dimension_numbers = #tpu.dot_dimension_numbers<[1], [0], [0], [1], [0, 0, 1, 1], [], []>} : vector<16x32xbf16>, vector<32x64xbf16>, vector<16x64xf32> -> vector<16x64xf32>
      %c0_82 = arith.constant 0 : index
      %c0_83 = arith.constant 0 : index
      %166 = vector.load %arg8[%c0_82, %c0_83] : memref<1x64xf32, #tpu.memory_space<vmem>>, vector<1x64xf32>
      %167 = vector.broadcast %166 : vector<1x64xf32> to vector<16x64xf32>
      %168 = arith.addf %165, %167 : vector<16x64xf32>
      %169 = arith.truncf %168 : vector<16x64xf32> to vector<16x64xbf16>
      %c0_84 = arith.constant 0 : index
      %c0_85 = arith.constant 0 : index
      %170 = vector.load %arg12[%c0_84, %c0_85] : memref<16x64xbf16, #tpu.memory_space<vmem>>, vector<16x64xbf16>
      tpu.vector_store %arg12[%c0_84, %c0_85], %169 {strides = array<i32>} : memref<16x64xbf16, #tpu.memory_space<vmem>>, vector<16x64xbf16>,
    } else {
    }
    %c8_i32 = arith.constant 8 : i32
    %3 = arith.muli %arg1, %c8_i32 : i32
    %4 = tpu.assume_multiple %3, 8 : i32
    %c0 = arith.constant 0 : index
    %5 = arith.index_cast %4 : i32 to index
    %c0_1 = arith.constant 0 : index
    %6 = vector.load %arg2[%c0, %5, %c0_1] : memref<1x16x32xf32, #tpu.memory_space<vmem>>, vector<1x8x32xf32>
    %7 = vector.shape_cast %6 : vector<1x8x32xf32> to vector<8x32xf32>
    %8 = arith.truncf %7 : vector<8x32xf32> to vector<8x32xbf16>
    %c0_2 = arith.constant 0 : index
    %c0_3 = arith.constant 0 : index
    %9 = vector.load %arg9[%c0_2, %c0_3] : memref<7x32xf32, #tpu.memory_space<vmem>>, vector<1x32xf32>
    %c1 = arith.constant 1 : index
    %c0_4 = arith.constant 0 : index
    %10 = vector.load %arg9[%c1, %c0_4] : memref<7x32xf32, #tpu.memory_space<vmem>>, vector<1x32xf32>
    %c2 = arith.constant 2 : index
    %c0_5 = arith.constant 0 : index
    %11 = vector.load %arg9[%c2, %c0_5] : memref<7x32xf32, #tpu.memory_space<vmem>>, vector<1x32xf32>
    %c3 = arith.constant 3 : index
    %c0_6 = arith.constant 0 : index
    %12 = vector.load %arg9[%c3, %c0_6] : memref<7x32xf32, #tpu.memory_space<vmem>>, vector<1x32xf32>
    %c4 = arith.constant 4 : index
    %c0_7 = arith.constant 0 : index
    %13 = vector.load %arg9[%c4, %c0_7] : memref<7x32xf32, #tpu.memory_space<vmem>>, vector<1x32xf32>
    %c5 = arith.constant 5 : index
    %c0_8 = arith.constant 0 : index
    %14 = vector.load %arg9[%c5, %c0_8] : memref<7x32xf32, #tpu.memory_space<vmem>>, vector<1x32xf32>
    %c6 = arith.constant 6 : index
    %c0_9 = arith.constant 0 : index
    %15 = vector.load %arg9[%c6, %c0_9] : memref<7x32xf32, #tpu.memory_space<vmem>>, vector<1x32xf32>
    %c0_10 = arith.constant 0 : index
    %c0_11 = arith.constant 0 : index
    %16 = vector.load %arg3[%c0_10, %c0_11] : memref<32x32xbf16, #tpu.memory_space<vmem>>, vector<32x32xbf16>
    %cst = arith.constant dense<0.000000e+00> : vector<8x32xf32>
    %17 = tpu.matmul %8, %16, %cst {dimension_numbers = #tpu.dot_dimension_numbers<[1], [0], [0], [1], [0, 0, 1, 1], [], []>} : vector<8x32xbf16>, vector<32x32xbf16>, vector<8x32xf32> -> vector<8x32xf32>
    %18 = vector.broadcast %9 : vector<1x32xf32> to vector<8x32xf32>
    %19 = arith.addf %17, %18 : vector<8x32xf32>
    %20 = arith.truncf %19 : vector<8x32xf32> to vector<8x32xbf16>
    %c0_12 = arith.constant 0 : index
    %c0_13 = arith.constant 0 : index
    %21 = vector.load %arg12[%c0_12, %c0_13] : memref<16x64xbf16, #tpu.memory_space<vmem>>, vector<16x8xbf16>
    %c0_14 = arith.constant 0 : index
    %c32 = arith.constant 32 : index
    %22 = vector.load %arg12[%c0_14, %c32] : memref<16x64xbf16, #tpu.memory_space<vmem>>, vector<16x8xbf16>
    %23 = vector.extract_strided_slice %20 {offsets = [0, 0], sizes = [8, 8], strides = [1, 1]} : vector<8x32xbf16> to vector<8x8xbf16>
    %cst_15 = arith.constant dense<0.000000e+00> : vector<8x16xf32>
    %24 = tpu.matmul %23, %21, %cst_15 {dimension_numbers = #tpu.dot_dimension_numbers<[1], [1], [0], [0], [0, 0, 1, 0], [], []>} : vector<8x8xbf16>, vector<16x8xbf16>, vector<8x16xf32> -> vector<8x16xf32>
    %cst_16 = arith.constant 0.353553385 : f32
    %25 = vector.broadcast %cst_16 : f32 to vector<8x16xf32>
    %26 = arith.mulf %24, %25 : vector<8x16xf32>
    %cst_17 = arith.constant dense<0xFF800000> : vector<8xf32>
    %27 = vector.multi_reduction <maximumf>, %26, %cst_17 [1] : vector<8x16xf32> to vector<8xf32>
    %28 = vector.shape_cast %27 : vector<8xf32> to vector<8x1xf32>
    %29 = vector.broadcast %28 : vector<8x1xf32> to vector<8x16xf32>
    %30 = arith.subf %26, %29 : vector<8x16xf32>
    %31 = math.exp %30 : vector<8x16xf32>
    %cst_18 = arith.constant dense<0.000000e+00> : vector<8xf32>
    %32 = vector.multi_reduction <add>, %31, %cst_18 [1] : vector<8x16xf32> to vector<8xf32>
    %33 = vector.shape_cast %32 : vector<8xf32> to vector<8x1xf32>
    %34 = tpu.reciprocal %33 {approx = true} : vector<8x1xf32> -> vector<8x1xf32>
    %35 = vector.broadcast %34 : vector<8x1xf32> to vector<8x16xf32>
    %36 = arith.mulf %31, %35 : vector<8x16xf32>
    %37 = arith.truncf %36 : vector<8x16xf32> to vector<8x16xbf16>
    %cst_19 = arith.constant dense<0.000000e+00> : vector<8x8xf32>
    %38 = tpu.matmul %37, %22, %cst_19 {dimension_numbers = #tpu.dot_dimension_numbers<[1], [0], [0], [1], [0, 0, 1, 1], [], []>} : vector<8x16xbf16>, vector<16x8xbf16>, vector<8x8xf32> -> vector<8x8xf32>
    %c0_20 = arith.constant 0 : index
    %c0_21 = arith.constant 0 : index
    %39 = vector.load %arg13[%c0_20, %c0_21] : memref<8x32xf32, #tpu.memory_space<vmem>>, vector<8x8xf32>
    tpu.vector_store %arg13[%c0_20, %c0_21], %38 {strides = array<i32>} : memref<8x32xf32, #tpu.memory_space<vmem>>, vector<8x8xf32>,
    %c0_22 = arith.constant 0 : index
    %c8 = arith.constant 8 : index
    %40 = vector.load %arg12[%c0_22, %c8] : memref<16x64xbf16, #tpu.memory_space<vmem>>, vector<16x8xbf16>
    %c0_23 = arith.constant 0 : index
    %c40 = arith.constant 40 : index
    %41 = vector.load %arg12[%c0_23, %c40] : memref<16x64xbf16, #tpu.memory_space<vmem>>, vector<16x8xbf16>
    %42 = vector.extract_strided_slice %20 {offsets = [0, 8], sizes = [8, 8], strides = [1, 1]} : vector<8x32xbf16> to vector<8x8xbf16>
    %cst_24 = arith.constant dense<0.000000e+00> : vector<8x16xf32>
    %43 = tpu.matmul %42, %40, %cst_24 {dimension_numbers = #tpu.dot_dimension_numbers<[1], [1], [0], [0], [0, 0, 1, 0], [], []>} : vector<8x8xbf16>, vector<16x8xbf16>, vector<8x16xf32> -> vector<8x16xf32>
    %cst_25 = arith.constant 0.353553385 : f32
    %44 = vector.broadcast %cst_25 : f32 to vector<8x16xf32>
    %45 = arith.mulf %43, %44 : vector<8x16xf32>
    %cst_26 = arith.constant dense<0xFF800000> : vector<8xf32>
    %46 = vector.multi_reduction <maximumf>, %45, %cst_26 [1] : vector<8x16xf32> to vector<8xf32>
    %47 = vector.shape_cast %46 : vector<8xf32> to vector<8x1xf32>
    %48 = vector.broadcast %47 : vector<8x1xf32> to vector<8x16xf32>
    %49 = arith.subf %45, %48 : vector<8x16xf32>
    %50 = math.exp %49 : vector<8x16xf32>
    %cst_27 = arith.constant dense<0.000000e+00> : vector<8xf32>
    %51 = vector.multi_reduction <add>, %50, %cst_27 [1] : vector<8x16xf32> to vector<8xf32>
    %52 = vector.shape_cast %51 : vector<8xf32> to vector<8x1xf32>
    %53 = tpu.reciprocal %52 {approx = true} : vector<8x1xf32> -> vector<8x1xf32>
    %54 = vector.broadcast %53 : vector<8x1xf32> to vector<8x16xf32>
    %55 = arith.mulf %50, %54 : vector<8x16xf32>
    %56 = arith.truncf %55 : vector<8x16xf32> to vector<8x16xbf16>
    %cst_28 = arith.constant dense<0.000000e+00> : vector<8x8xf32>
    %57 = tpu.matmul %56, %41, %cst_28 {dimension_numbers = #tpu.dot_dimension_numbers<[1], [0], [0], [1], [0, 0, 1, 1], [], []>} : vector<8x16xbf16>, vector<16x8xbf16>, vector<8x8xf32> -> vector<8x8xf32>
    %c0_29 = arith.constant 0 : index
    %c8_30 = arith.constant 8 : index
    %58 = vector.load %arg13[%c0_29, %c8_30] : memref<8x32xf32, #tpu.memory_space<vmem>>, vector<8x8xf32>
    tpu.vector_store %arg13[%c0_29, %c8_30], %57 {strides = array<i32>} : memref<8x32xf32, #tpu.memory_space<vmem>>, vector<8x8xf32>,
    %c0_31 = arith.constant 0 : index
    %c16 = arith.constant 16 : index
    %59 = vector.load %arg12[%c0_31, %c16] : memref<16x64xbf16, #tpu.memory_space<vmem>>, vector<16x8xbf16>
    %c0_32 = arith.constant 0 : index
    %c48 = arith.constant 48 : index
    %60 = vector.load %arg12[%c0_32, %c48] : memref<16x64xbf16, #tpu.memory_space<vmem>>, vector<16x8xbf16>
    %61 = vector.extract_strided_slice %20 {offsets = [0, 16], sizes = [8, 8], strides = [1, 1]} : vector<8x32xbf16> to vector<8x8xbf16>
    %cst_33 = arith.constant dense<0.000000e+00> : vector<8x16xf32>
    %62 = tpu.matmul %61, %59, %cst_33 {dimension_numbers = #tpu.dot_dimension_numbers<[1], [1], [0], [0], [0, 0, 1, 0], [], []>} : vector<8x8xbf16>, vector<16x8xbf16>, vector<8x16xf32> -> vector<8x16xf32>
    %cst_34 = arith.constant 0.353553385 : f32
    %63 = vector.broadcast %cst_34 : f32 to vector<8x16xf32>
    %64 = arith.mulf %62, %63 : vector<8x16xf32>
    %cst_35 = arith.constant dense<0xFF800000> : vector<8xf32>
    %65 = vector.multi_reduction <maximumf>, %64, %cst_35 [1] : vector<8x16xf32> to vector<8xf32>
    %66 = vector.shape_cast %65 : vector<8xf32> to vector<8x1xf32>
    %67 = vector.broadcast %66 : vector<8x1xf32> to vector<8x16xf32>
    %68 = arith.subf %64, %67 : vector<8x16xf32>
    %69 = math.exp %68 : vector<8x16xf32>
    %cst_36 = arith.constant dense<0.000000e+00> : vector<8xf32>
    %70 = vector.multi_reduction <add>, %69, %cst_36 [1] : vector<8x16xf32> to vector<8xf32>
    %71 = vector.shape_cast %70 : vector<8xf32> to vector<8x1xf32>
    %72 = tpu.reciprocal %71 {approx = true} : vector<8x1xf32> -> vector<8x1xf32>
    %73 = vector.broadcast %72 : vector<8x1xf32> to vector<8x16xf32>
    %74 = arith.mulf %69, %73 : vector<8x16xf32>
    %75 = arith.truncf %74 : vector<8x16xf32> to vector<8x16xbf16>
    %cst_37 = arith.constant dense<0.000000e+00> : vector<8x8xf32>
    %76 = tpu.matmul %75, %60, %cst_37 {dimension_numbers = #tpu.dot_dimension_numbers<[1], [0], [0], [1], [0, 0, 1, 1], [], []>} : vector<8x16xbf16>, vector<16x8xbf16>, vector<8x8xf32> -> vector<8x8xf32>
    %c0_38 = arith.constant 0 : index
    %c16_39 = arith.constant 16 : index
    %77 = vector.load %arg13[%c0_38, %c16_39] : memref<8x32xf32, #tpu.memory_space<vmem>>, vector<8x8xf32>
    tpu.vector_store %arg13[%c0_38, %c16_39], %76 {strides = array<i32>} : memref<8x32xf32, #tpu.memory_space<vmem>>, vector<8x8xf32>,
    %c0_40 = arith.constant 0 : index
    %c24 = arith.constant 24 : index
    %78 = vector.load %arg12[%c0_40, %c24] : memref<16x64xbf16, #tpu.memory_space<vmem>>, vector<16x8xbf16>
    %c0_41 = arith.constant 0 : index
    %c56 = arith.constant 56 : index
    %79 = vector.load %arg12[%c0_41, %c56] : memref<16x64xbf16, #tpu.memory_space<vmem>>, vector<16x8xbf16>
    %80 = vector.extract_strided_slice %20 {offsets = [0, 24], sizes = [8, 8], strides = [1, 1]} : vector<8x32xbf16> to vector<8x8xbf16>
    %cst_42 = arith.constant dense<0.000000e+00> : vector<8x16xf32>
    %81 = tpu.matmul %80, %78, %cst_42 {dimension_numbers = #tpu.dot_dimension_numbers<[1], [1], [0], [0], [0, 0, 1, 0], [], []>} : vector<8x8xbf16>, vector<16x8xbf16>, vector<8x16xf32> -> vector<8x16xf32>
    %cst_43 = arith.constant 0.353553385 : f32
    %82 = vector.broadcast %cst_43 : f32 to vector<8x16xf32>
    %83 = arith.mulf %81, %82 : vector<8x16xf32>
    %cst_44 = arith.constant dense<0xFF800000> : vector<8xf32>
    %84 = vector.multi_reduction <maximumf>, %83, %cst_44 [1] : vector<8x16xf32> to vector<8xf32>
    %85 = vector.shape_cast %84 : vector<8xf32> to vector<8x1xf32>
    %86 = vector.broadcast %85 : vector<8x1xf32> to vector<8x16xf32>
    %87 = arith.subf %83, %86 : vector<8x16xf32>
    %88 = math.exp %87 : vector<8x16xf32>
    %cst_45 = arith.constant dense<0.000000e+00> : vector<8xf32>
    %89 = vector.multi_reduction <add>, %88, %cst_45 [1] : vector<8x16xf32> to vector<8xf32>
    %90 = vector.shape_cast %89 : vector<8xf32> to vector<8x1xf32>
    %91 = tpu.reciprocal %90 {approx = true} : vector<8x1xf32> -> vector<8x1xf32>
    %92 = vector.broadcast %91 : vector<8x1xf32> to vector<8x16xf32>
    %93 = arith.mulf %88, %92 : vector<8x16xf32>
    %94 = arith.truncf %93 : vector<8x16xf32> to vector<8x16xbf16>
    %cst_46 = arith.constant dense<0.000000e+00> : vector<8x8xf32>
    %95 = tpu.matmul %94, %79, %cst_46 {dimension_numbers = #tpu.dot_dimension_numbers<[1], [0], [0], [1], [0, 0, 1, 1], [], []>} : vector<8x16xbf16>, vector<16x8xbf16>, vector<8x8xf32> -> vector<8x8xf32>
    %c0_47 = arith.constant 0 : index
    %c24_48 = arith.constant 24 : index
    %96 = vector.load %arg13[%c0_47, %c24_48] : memref<8x32xf32, #tpu.memory_space<vmem>>, vector<8x8xf32>
    tpu.vector_store %arg13[%c0_47, %c24_48], %95 {strides = array<i32>} : memref<8x32xf32, #tpu.memory_space<vmem>>, vector<8x8xf32>,
    %c0_49 = arith.constant 0 : index
    %c0_50 = arith.constant 0 : index
    %97 = vector.load %arg13[%c0_49, %c0_50] : memref<8x32xf32, #tpu.memory_space<vmem>>, vector<8x32xf32>
    %98 = arith.truncf %97 : vector<8x32xf32> to vector<8x32xbf16>
    %c0_51 = arith.constant 0 : index
    %c0_52 = arith.constant 0 : index
    %99 = vector.load %arg5[%c0_51, %c0_52] : memref<32x32xbf16, #tpu.memory_space<vmem>>, vector<32x32xbf16>
    %cst_53 = arith.constant dense<0.000000e+00> : vector<8x32xf32>
    %100 = tpu.matmul %98, %99, %cst_53 {dimension_numbers = #tpu.dot_dimension_numbers<[1], [0], [0], [1], [0, 0, 1, 1], [], []>} : vector<8x32xbf16>, vector<32x32xbf16>, vector<8x32xf32> -> vector<8x32xf32>
    %101 = vector.broadcast %10 : vector<1x32xf32> to vector<8x32xf32>
    %102 = arith.addf %100, %101 : vector<8x32xf32>
    %103 = arith.addf %7, %102 : vector<8x32xf32>
    %cst_54 = arith.constant dense<0.000000e+00> : vector<8xf32>
    %104 = vector.multi_reduction <add>, %103, %cst_54 [1] : vector<8x32xf32> to vector<8xf32>
    %105 = vector.shape_cast %104 : vector<8xf32> to vector<8x1xf32>
    %cst_55 = arith.constant 3.200000e+01 : f32
    %106 = vector.broadcast %cst_55 : f32 to vector<8x1xf32>
    %107 = arith.divf %105, %106 : vector<8x1xf32>
    %108 = vector.broadcast %107 : vector<8x1xf32> to vector<8x32xf32>
    %109 = arith.subf %103, %108 : vector<8x32xf32>
    %110 = arith.mulf %109, %109 : vector<8x32xf32>
    %cst_56 = arith.constant dense<0.000000e+00> : vector<8xf32>
    %111 = vector.multi_reduction <add>, %110, %cst_56 [1] : vector<8x32xf32> to vector<8xf32>
    %112 = vector.shape_cast %111 : vector<8xf32> to vector<8x1xf32>
    %cst_57 = arith.constant 3.200000e+01 : f32
    %113 = vector.broadcast %cst_57 : f32 to vector<8x1xf32>
    %114 = arith.divf %112, %113 : vector<8x1xf32>
    %cst_58 = arith.constant 9.99999974E-6 : f32
    %115 = vector.broadcast %cst_58 : f32 to vector<8x1xf32>
    %116 = arith.addf %114, %115 : vector<8x1xf32>
    %117 = math.rsqrt %116 : vector<8x1xf32>
    %118 = vector.broadcast %117 : vector<8x1xf32> to vector<8x32xf32>
    %119 = arith.mulf %109, %118 : vector<8x32xf32>
    %120 = vector.broadcast %12 : vector<1x32xf32> to vector<8x32xf32>
    %121 = arith.mulf %119, %120 : vector<8x32xf32>
    %122 = vector.broadcast %13 : vector<1x32xf32> to vector<8x32xf32>
    %123 = arith.addf %121, %122 : vector<8x32xf32>
    %124 = arith.truncf %123 : vector<8x32xf32> to vector<8x32xbf16>
    %c0_59 = arith.constant 0 : index
    %c0_60 = arith.constant 0 : index
    %125 = vector.load %arg6[%c0_59, %c0_60] : memref<32x64xbf16, #tpu.memory_space<vmem>>, vector<32x64xbf16>
    %cst_61 = arith.constant dense<0.000000e+00> : vector<8x64xf32>
    %126 = tpu.matmul %124, %125, %cst_61 {dimension_numbers = #tpu.dot_dimension_numbers<[1], [0], [0], [1], [0, 0, 1, 1], [], []>} : vector<8x32xbf16>, vector<32x64xbf16>, vector<8x64xf32> -> vector<8x64xf32>
    %c0_62 = arith.constant 0 : index
    %c0_63 = arith.constant 0 : index
    %127 = vector.load %arg10[%c0_62, %c0_63] : memref<1x64xf32, #tpu.memory_space<vmem>>, vector<1x64xf32>
    %128 = vector.broadcast %127 : vector<1x64xf32> to vector<8x64xf32>
    %129 = arith.addf %126, %128 : vector<8x64xf32>
    %cst_64 = arith.constant 0.000000e+00 : f32
    %130 = vector.broadcast %cst_64 : f32 to vector<8x64xf32>
    %131 = arith.maximumf %129, %130 : vector<8x64xf32>
    %132 = arith.truncf %131 : vector<8x64xf32> to vector<8x64xbf16>
    %c0_65 = arith.constant 0 : index
    %c0_66 = arith.constant 0 : index
    %133 = vector.load %arg7[%c0_65, %c0_66] : memref<64x32xbf16, #tpu.memory_space<vmem>>, vector<64x32xbf16>
    %cst_67 = arith.constant dense<0.000000e+00> : vector<8x32xf32>
    %134 = tpu.matmul %132, %133, %cst_67 {dimension_numbers = #tpu.dot_dimension_numbers<[1], [0], [0], [1], [0, 0, 1, 1], [], []>} : vector<8x64xbf16>, vector<64x32xbf16>, vector<8x32xf32> -> vector<8x32xf32>
    %135 = vector.broadcast %11 : vector<1x32xf32> to vector<8x32xf32>
    %136 = arith.addf %134, %135 : vector<8x32xf32>
    %137 = arith.addf %123, %136 : vector<8x32xf32>
    %cst_68 = arith.constant dense<0.000000e+00> : vector<8xf32>
    %138 = vector.multi_reduction <add>, %137, %cst_68 [1] : vector<8x32xf32> to vector<8xf32>
    %139 = vector.shape_cast %138 : vector<8xf32> to vector<8x1xf32>
    %cst_69 = arith.constant 3.200000e+01 : f32
    %140 = vector.broadcast %cst_69 : f32 to vector<8x1xf32>
    %141 = arith.divf %139, %140 : vector<8x1xf32>
    %142 = vector.broadcast %141 : vector<8x1xf32> to vector<8x32xf32>
    %143 = arith.subf %137, %142 : vector<8x32xf32>
    %144 = arith.mulf %143, %143 : vector<8x32xf32>
    %cst_70 = arith.constant dense<0.000000e+00> : vector<8xf32>
    %145 = vector.multi_reduction <add>, %144, %cst_70 [1] : vector<8x32xf32> to vector<8xf32>
    %146 = vector.shape_cast %145 : vector<8xf32> to vector<8x1xf32>
    %cst_71 = arith.constant 3.200000e+01 : f32
    %147 = vector.broadcast %cst_71 : f32 to vector<8x1xf32>
    %148 = arith.divf %146, %147 : vector<8x1xf32>
    %cst_72 = arith.constant 9.99999974E-6 : f32
    %149 = vector.broadcast %cst_72 : f32 to vector<8x1xf32>
    %150 = arith.addf %148, %149 : vector<8x1xf32>
    %151 = math.rsqrt %150 : vector<8x1xf32>
    %152 = vector.broadcast %151 : vector<8x1xf32> to vector<8x32xf32>
    %153 = arith.mulf %143, %152 : vector<8x32xf32>
    %154 = vector.broadcast %14 : vector<1x32xf32> to vector<8x32xf32>
    %155 = arith.mulf %153, %154 : vector<8x32xf32>
    %156 = vector.broadcast %15 : vector<1x32xf32> to vector<8x32xf32>
    %157 = arith.addf %155, %156 : vector<8x32xf32>
    %c0_73 = arith.constant 0 : index
    %c0_74 = arith.constant 0 : index
    %c0_75 = arith.constant 0 : index
    %158 = vector.load %arg11[%c0_73, %c0_74, %c0_75] : memref<1x8x32xf32, #tpu.memory_space<vmem>>, vector<1x8x32xf32>
    %159 = vector.shape_cast %158 : vector<1x8x32xf32> to vector<8x32xf32>
    %160 = vector.shape_cast %157 : vector<8x32xf32> to vector<1x8x32xf32>
    tpu.vector_store %arg11[%c0_73, %c0_74, %c0_75], %160 {strides = array<i32>} : memref<1x8x32xf32, #tpu.memory_space<vmem>>, vector<1x8x32xf32>,
    return
  }
  func.func @transform_0(%arg0: i32, %arg1: i32) -> (i32, i32, i32) {
    %c0_i32 = arith.constant 0 : i32
    %c0_i32_0 = arith.constant 0 : i32
    %c0_i32_1 = arith.constant 0 : i32
    return %arg0, %c0_i32, %c0_i32_0 : i32, i32, i32
  }
  func.func @transform_1(%arg0: i32, %arg1: i32) -> (i32, i32) {
    %c0_i32 = arith.constant 0 : i32
    %c0_i32_0 = arith.constant 0 : i32
    %c0_i32_1 = arith.constant 0 : i32
    return %c0_i32, %c0_i32_0 : i32, i32
  }
  func.func @transform_2(%arg0: i32, %arg1: i32) -> (i32, i32) {
    %c0_i32 = arith.constant 0 : i32
    %c0_i32_0 = arith.constant 0 : i32
    %c0_i32_1 = arith.constant 0 : i32
    return %c0_i32, %c0_i32_0 : i32, i32
  }
  func.func @transform_3(%arg0: i32, %arg1: i32) -> (i32, i32) {
    %c0_i32 = arith.constant 0 : i32
    %c0_i32_0 = arith.constant 0 : i32
    %c0_i32_1 = arith.constant 0 : i32
    return %c0_i32, %c0_i32_0 : i32, i32
  }
  func.func @transform_4(%arg0: i32, %arg1: i32) -> (i32, i32) {
    %c0_i32 = arith.constant 0 : i32
    %c0_i32_0 = arith.constant 0 : i32
    %c0_i32_1 = arith.constant 0 : i32
    return %c0_i32, %c0_i32_0 : i32, i32
  }
  func.func @transform_5(%arg0: i32, %arg1: i32) -> (i32, i32) {
    %c0_i32 = arith.constant 0 : i32
    %c0_i32_0 = arith.constant 0 : i32
    %c0_i32_1 = arith.constant 0 : i32
    return %c0_i32, %c0_i32_0 : i32, i32
  }
  func.func @transform_6(%arg0: i32, %arg1: i32) -> (i32, i32) {
    %c0_i32 = arith.constant 0 : i32
    %c0_i32_0 = arith.constant 0 : i32
    %c0_i32_1 = arith.constant 0 : i32
    return %c0_i32, %c0_i32_0 : i32, i32
  }
  func.func @transform_7(%arg0: i32, %arg1: i32) -> (i32, i32) {
    %c0_i32 = arith.constant 0 : i32
    %c0_i32_0 = arith.constant 0 : i32
    %c0_i32_1 = arith.constant 0 : i32
    return %c0_i32, %c0_i32_0 : i32, i32
  }
  func.func @transform_8(%arg0: i32, %arg1: i32) -> (i32, i32) {
    %c0_i32 = arith.constant 0 : i32
    %c0_i32_0 = arith.constant 0 : i32
    %c0_i32_1 = arith.constant 0 : i32
    return %c0_i32, %c0_i32_0 : i32, i32
  }
  func.func @transform_9(%arg0: i32, %arg1: i32) -> (i32, i32, i32) {
    %c0_i32 = arith.constant 0 : i32
    %c0_i32_0 = arith.constant 0 : i32
    return %arg0, %arg1, %c0_i32 : i32, i32, i32
  }
}

</mosaic_0001>

<bundles_post_ra>
// kernel: tpu_custom_call.1
= control target key start
LH: loop header
LB: loop body
LE: loop exit
PB: predicated region body
PF: predicated region fallthrough
CT: control target
= control target key end

     0   :  { %s2366_s0 = inlined_call_operand.vmem [shape: f32[2,16,32], index: 0, kind: input, shape index: {}]   ;;  %s2367_s1 = inlined_call_operand.vmem [shape: bf16[32,32], index: 1, kind: input, shape index: {}]   ;;  %s2368_s2 = inlined_call_operand.hbm [shape: bf16[32,64], index: 2, kind: input, shape index: {}]   ;;  %s2369_s3 = inlined_call_operand.hbm [shape: bf16[32,32], index: 3, kind: input, shape index: {}]   ;;  %s2370_s4 = inlined_call_operand.hbm [shape: bf16[32,64], index: 4, kind: input, shape index: {}]   ;;  %s2371_s5 = inlined_call_operand.vmem [shape: bf16[64,32], index: 5, kind: input, shape index: {}]   ;;  %s2372_s6 = inlined_call_operand.vmem [shape: f32[1,64], index: 6, kind: input, shape index: {}]   ;;  %s2373_s7 = inlined_call_operand.vmem [shape: f32[7,32], index: 7, kind: input, shape index: {}]   ;;  %s2374_s8 = inlined_call_operand.vmem [shape: f32[1,64], index: 8, kind: input, shape index: {}]   ;;  %s2375_s9 = inlined_call_operand.hbm [shape: f32[2,16,32], index: 9, kind: output, shape index: {}]  }
   0x1   :  { %2390 = sst [smem:[#allocation23_spill]] %s2375_s9 }
   0x2   :  { %14 = vsyncpa [#allocation5], 0 }
   0x3   :  { %15 = vsyncpa [#allocation8], 0 }
   0x4   :  { %16 = vsyncpa [#allocation6], 0 }
   0x5   :  { %18 = vsyncpa [#allocation6 + $0x1], 0  ;;  %s1980_s30 = smov 0   ;;  %s1982_s10 = smov 0  }
   0x6   :  { %s1984_s11 = smov 0   ;;  %s1986_s12 = smov 0  }
   0x7   :  { %s1988_s13 = smov 0   ;;  %s1990_s14 = smov 0  }
   0x8   :  { %s1992_s15 = smov 0   ;;  %s1994_s16 = smov 0  }
   0x9 LB: > { %2391 = sst [smem:[#allocation14_spill]] %s1880_s30  ;;  %s1391_s17 = sadd.s32 4294967295, %s1908_s16   ;;  %s1908_s16 = sphi %s1994_s16, %s24_s16   ;;  %s1904_s15 = sphi %s1992_s15, %s2420_s15   ;;  %s1900_s14 = sphi %s1990_s14, %s2419_s14   ;;  %s1896_s13 = sphi %s1988_s13, %s2423_s13   ;;  %s1892_s12 = sphi %s1986_s12, %s2417_s12   ;;  %s1888_s11 = sphi %s1984_s11, %s2416_s11   ;;  %s1884_s10 = sphi %s1982_s10, %s2422_s10   ;;  %s1880_s30 = sphi %s1980_s30, %s2421_s30  }
   0xa   : > { %2392 = sst [smem:[#allocation15_spill]] %s1888_s11  ;;  %s1392_s18 = sadd.s32 4294967294, %s1908_s16  }
   0xb   : > { %2393 = sst [smem:[#allocation16_spill]] %s1900_s14  ;;  %s33_s19 = sadd.s32 1, %s1900_s14 }
   0xc   : > { %2394 = sst [smem:[#allocation17_spill]] %s1904_s15  ;;  %s36_s20 = sadd.s32 1, %s1904_s15 }
   0xd   : > { %2395 = sst [smem:[#allocation18_spill]] %s1908_s16  ;;  %p34_p0 = scmp.ge.s32.totalorder %s33_s19, 2 }
   0xe   : > { %s239_s21 = sadd.s32 1, %s1888_s11  ;;  %p249_p1 = scmp.ne.s32.totalorder %s1888_s11, %s1884_s10 }
   0xf   : > { %p250_p2 = scmp.eq.s32.totalorder %s1391_s17, 3  ;;  %s2425_s19 = smov (%p34_p0, %s33_s19), 0 }
  0x10   : > { %2396 = sst [smem:[#allocation19_spill]] %s2425_s19  ;;  %s2427_s20 = smov (!%p34_p0, %s36_s20), %s1904_s15 }
  0x11   : > { %s235_s22 = ssub.s32 %s1900_s14, %s2425_s19  ;;  %p2032_p3 = por %p250_p2, %p249_p1 }
  0x12   : > { %p38_p4 = scmp.ge.s32.totalorder %s2427_s20, 2  ;;  %p255_p5 = scmp.ne.s32.totalorder %s1884_s10, %s1880_s30 }
  0x13   : > { %s2397_s23 = scalar_select %p2032_p3, 1, 0 }
  0x14   : > { %p256_p6 = scmp.eq.s32.totalorder %s1392_s18, 3  ;;  %p1393_p7 = scmp.ge.s32.totalorder %s1908_s16, 1 }
  0x15   : > { %s2429_s20 = smov (%p38_p4, %s2427_s20), 0  ;;  %p263_p9 = scmp.lt.s32.totalorder %s1908_s16, 5 }
  0x16   : > { %2398 = sst [smem:[#allocation20_spill]] %s2429_s20  ;;  %p2041_p8 = por %p256_p6, %p255_p5 }
  0x17   : > { %s234_s25 = ssub.s32 %s1904_s15, %s2429_s20  ;;  %p2048_p10 = pnand %p1393_p7, %p263_p9 }
  0x18   : > { %s2399_s24 = scalar_select %p2041_p8, 1, 0 }
  0x19   : > { %s236_s26 = sor.u32 %s235_s22, %s234_s25  ;;  %p2052_p12 = scmp.eq.s32.totalorder %s1391_s17, 0 }
  0x1a   : > { %2400 = sst [smem:[#allocation21_spill]] %s2399_s24  ;;  %p237_p11 = scmp.eq.s32.totalorder %s236_s26, 0 }
  0x1b   : > { %s2401_s27 = scalar_select %p2048_p10, 1, 0 }
  0x1c   : > { %s2402_s28 = scalar_select %p2052_p12, 1, 0 }
  0x1d   : > { %p1586_p13 = pneg %p2048_p10  ;;  %s1910_s22 = smov [#allocation7]  }
  0x1e   : > { %s2059_s29 = scalar_select %p237_p11, %s1888_s11, %s239_s21  }
  0x1f   : > { %p2063_p0 = pnand %p2052_p12, %p1586_p13  ;;  %s291_s25 = sshll.u32 %s1910_s22, 4  ;;  %s292_s25 = int_to_ptr.vmem [resolvable:$true] %s291_s25 }
  0x20   : > { %2403 = sst [smem:[#allocation22_spill]] %s2059_s29  ;;  %s1722_s17 = scalar_lea.hbm %s2369_s3, 256 }
  0x21   : > { %p1723_p1 = scmp.ne.s32.totalorder %s2369_s3, %s1722_s17  ;;  %p2075_p2 = pneg %p2063_p0 }
  0x22   : > { %p1729_p6 = scmp.lt.u32.totalorder %s1722_s17, %s2369_s3 }
  0x23   : > { %p1725_p4 = pnand %p2075_p2, %p1723_p1 }
  0x25   : > { %p1726_p5 = pneg %p1725_p4 }
  0x27   : > { %p1731_p7 = pnand %p1729_p6, %p1726_p5 }
  0x29   : > { %1734 = shalt.err (!%p1731_p7)
}
  0x2a   : > { %s1735_s20 = scalar_lea.vmem %s292_s25, 256  ;;  %p1743_p8 = scmp.lt.s32.totalorder %s292_s25, %s292_s25 }
  0x2b   : > { %p1736_p9 = scmp.ne.s32.totalorder %s292_s25, %s1735_s20  ;;  %p1744_p3 = scmp.lt.s32.totalorder %s1735_s20, %s1735_s20 }
  0x2d   : > { %p1738_p11 = pnand %p1736_p9, %p2075_p2  ;;  %p1745_p12 = por %p1744_p3, %p1743_p8 }
  0x2f   : > { %p1739_p13 = pneg %p1738_p11 }
  0x31   : > { %p1746_p10 = pnand %p1745_p12, %p1739_p13 }
  0x33   : > { %1749 = shalt.err (!%p1746_p10)
}
  0x34   : > { %s1911_s15 = smov 64   ;;  %s1912_s19 = smov 4  }
  0x35   : > { %1592 = dma.hbm_to_vmem [thread:$0]  (!%p2063_p0), %s2369_s3, 256, %s292_s25, [#allocation8], %s1911_s15, %s1911_s15, %s1912_s19  }
  0x36   : > { %s1913_s17 = smov [#allocation4]   ;;  %s1914_s29 = smov [#allocation9]  }
  0x37   : > { %s278_s22 = sshll.u32 %s1913_s17, 4  ;;  %s304_s11 = sshll.u32 %s1914_s29, 4  ;;  %s279_s22 = int_to_ptr.vmem [resolvable:$true] %s278_s22  ;;  %s2094_s11 = int_to_ptr.vmem [resolvable:$true] %s304_s11 }
  0x38   : > { %s1750_s30 = scalar_lea.hbm %s2368_s2, 256 }
  0x39   : > { %p1751_p3 = scmp.ne.s32.totalorder %s2368_s2, %s1750_s30  ;;  %p1757_p12 = scmp.lt.u32.totalorder %s1750_s30, %s2368_s2 }
  0x3b   : > { %p1753_p8 = pnand %p1751_p3, %p2075_p2 }
  0x3d   : > { %p1754_p10 = pneg %p1753_p8 }
  0x3f   : > { %p1759_p1 = pnand %p1757_p12, %p1754_p10 }
  0x41   : > { %1762 = shalt.err (!%p1759_p1)
}
  0x42   : > { %s1763_s29 = scalar_lea.vmem %s279_s22, 256  ;;  %p1771_p7 = scmp.lt.s32.totalorder %s279_s22, %s279_s22 }
  0x43   : > { %p1764_p4 = scmp.ne.s32.totalorder %s279_s22, %s1763_s29  ;;  %p1772_p9 = scmp.lt.s32.totalorder %s1763_s29, %s1763_s29 }
  0x45   : > { %p1766_p5 = pnand %p1764_p4, %p2075_p2  ;;  %p1773_p11 = por %p1772_p9, %p1771_p7 }
  0x47   : > { %p1767_p6 = pneg %p1766_p5 }
  0x49   : > { %p1774_p13 = pnand %p1773_p11, %p1767_p6 }
  0x4b   : > { %1777 = shalt.err (!%p1774_p13)
}
  0x4c   : > { %1589 = dma.hbm_to_vmem [thread:$0]  (!%p2063_p0), %s2368_s2, 256, %s279_s22, [#allocation5], %s1911_s15, %s1911_s15, %s1912_s19  }
  0x4d   : > { %s1778_s26 = scalar_lea.hbm %s2370_s4, 256 }
  0x4e   : > { %p1779_p3 = scmp.ne.s32.totalorder %s2370_s4, %s1778_s26  ;;  %p1785_p12 = scmp.lt.u32.totalorder %s1778_s26, %s2370_s4 }
  0x50   : > { %p1781_p8 = pnand %p1779_p3, %p2075_p2 }
  0x52   : > { %p1782_p10 = pneg %p1781_p8 }
  0x54   : > { %p1787_p1 = pnand %p1785_p12, %p1782_p10 }
  0x56   : > { %1790 = shalt.err (!%p1787_p1)
}
  0x57   : > { %s1791_s22 = scalar_lea.vmem %s2094_s11, 256  ;;  %p1799_p7 = scmp.lt.s32.totalorder %s2094_s11, %s2094_s11 }
  0x58   : > { %p1792_p4 = scmp.ne.s32.totalorder %s2094_s11, %s1791_s22  ;;  %p1800_p9 = scmp.lt.s32.totalorder %s1791_s22, %s1791_s22 }
  0x5a   : > { %p1794_p5 = pnand %p1792_p4, %p2075_p2  ;;  %p1801_p11 = por %p1800_p9, %p1799_p7 }
  0x5c   : > { %p1795_p6 = pneg %p1794_p5 }
  0x5e   : > { %p1802_p13 = pnand %p1801_p11, %p1795_p6 }
  0x60   : > { %1805 = shalt.err (!%p1802_p13)
}
  0x61   : > { %1595 = dma.hbm_to_vmem [thread:$0]  (!%p2063_p0), %s2370_s4, 256, %s2094_s11, [#allocation8], %s1911_s15, %s1911_s15, %s1912_s19  }
  0x62   : > { %p2406_p3 = scmp.ne.s32.totalorder %s2401_s27, 0 }
  0x63   : > { %p2407_p2 = scmp.ne.s32.totalorder (!%p2406_p3), %s2402_s28, 0 }
  0x64   : > { %340 = sbr.rel (%p2406_p3) target bundleno = 2864 (0xb30), region = 56 }
  0x6b   : > { %1867 = dma.done.wait (%p2407_p2), [#allocation5], 256  }
  0x6c   : > { %1869 = vsyncadd (%p2407_p2), [#allocation5], 4294967040 }
  0x6d   : > { %1871 = dma.done.wait (%p2407_p2), [#allocation8], 512  }
  0x6e   : > { %1873 = vsyncadd (%p2407_p2), [#allocation8], 4294966784  ;;  %s381_s11 = sand.u32 1, %s1884_s10   ;;  %p384_p0 = scmp.lt.s32.totalorder %s1896_s13, 1 }
  0x6f   : > { %s2157_s27 = sshll.u32 %s381_s11, 3  ;;  %p1405_p8 = scmp.ne.s32.totalorder %s1892_s12, 0 }
  0x70   : > { %s385_s18 = scalar_select %p384_p0, %s1896_s13, 1 }
  0x71   : > { %s383_s16 = scalar_lea.vmem [#allocation10], %s2157_s27  ;;  %393 = sbr.rel (%p1405_p8) target bundleno = 341 (0x155), region = 72  ;;  %v1690_v0 = vld [vmem:[#allocation4] sm:$0xff] (!%p1405_p8)   ;;  %v1915_v1 = vmov (!%p1405_p8), 0.0   ;;  %v1691_v2 = vld [vmem:[#allocation4 + $0x8] sm:$0xff] (!%p1405_p8)   ;;  %vm1916_vm0 = vmmov (!%p1405_p8), 0  }
  0x72   : > { %s1446_s21 = sshll.u32 %s385_s18, 4  ;;  %1480 = vmatprep.subr.bf16.mxu0 (!%p1405_p8), %v1915_v1  ;;  %1484 = vmatprep.mubr.msk.bf16.mxu0 (!%p1405_p8), %vm1916_vm0, %v1915_v1  ;;  %vm420_vm1 = vcmask (!%p1405_p8), 261120   ;;  %v1406_v6 = vld [vmem:[%s2372_s6] ss:$0 sm:$0xff] (!%p1405_p8)  ;;  %vm466_vm2 = vcmask (!%p1405_p8), 523264  }
  0x73   : > { %s2163_s30 = scalar_lea.vmem %s2366_s0, %s1446_s21  ;;  %1481 = vmatpush3.bf16.msra.mxu0 (!%p1405_p8), %v1690_v0 }
  0x74   : > { %v394_v3 = vld [vmem:[%s2163_s30] sm:$0xff] (!%p1405_p8)  ;;  %v395_v4 = vld [vmem:[%s2163_s30 + $0x8] sm:$0xff] (!%p1405_p8)  ;;  %1482 = vmatprep.subr.bf16.mxu0 (!%p1405_p8), %v1915_v1 }
  0x75   : > { %v396_v5 = vpack.c.bf16 (!%p1405_p8), %v395_v4, %v394_v3 }
  0x77   : > { %1483 = vmatpush3.bf16.msra.mxu0 (!%p1405_p8), %v1691_v2 }
  0x7a   : > { %1485 = vmatmul.mubr.msk.bf16.vlgmr.msra.gmra.mrb[0].mxu0 %vm420_vm1, %v396_v5 }
 0x14d   : > { %v458_v7 = vpop.f32.mrb[0].mxu0 }
 0x14e   : > { %v1486_v8 = vpop.f32.mrb[1].mxu0  ;;  %v459_v10 = vadd.f32 %v1406_v6, %v458_v7 }
 0x14f   : > { %v461_v9 = vpop.f32.mrb[2].mxu0 }
 0x150   : > { %v462_v11 = vadd.f32 %v1406_v6, %v461_v9  ;;  %v1487_v12 = vpop.f32.mrb[3].mxu0 }
 0x152   : > { %v465_v13 = vpack.c.bf16 %v462_v11, %v459_v10 }
 0x154   : > { %467 = vst.msk [vmem:[#allocation2] sm:$0xff] %vm466_vm2, %v465_v13 }
 0x155 PF: > { %v1692_v14 = vld [vmem:[%s2367_s1] sm:$0xff]   ;;  %v1917_v15 = vmov 0.0   ;;  %v1693_v16 = vld [vmem:[%s2367_s1 + $0x8] sm:$0xff]   ;;  %vm1918_vm3 = vmmov 0   ;;  %s1410_s25 = sshll.u32 %s1892_s12, 3  ;;  %vm545_vm4 = vcmask 64512  }
 0x156   : > { %1488 = vmatprep.subr.bf16.mxu0 %v1917_v15  ;;  %1496 = vmatprep.subr.bf16.mxu1 %v1917_v15  ;;  %s469_s22 = scalar_lea.vmem %s2163_s30, %s1410_s25  ;;  %s1919_s29 = smov 120   ;;  %vm499_vm5 = vcmask 261120   ;;  %v1411_v21 = vld [vmem:[%s2373_s7] ss:$0 sm:$0xff]  ;;  %vm593_vm6 = vcmask 130048   ;;  %vm770_vm7 = vcmask 130112  }
 0x157   : > { %1489 = vmatpush3.bf16.msra.mxu0 %v1692_v14  ;;  %1492 = vmatprep.mubr.msk.bf16.mxu0 %vm1918_vm3, %v1917_v15  ;;  %v2190_v19 = vld [vmem:[%s469_s22] sm:$0xff]  ;;  %s1920_s9 = smov 112   ;;  %s1921_s15 = smov 104   ;;  %vm887_vm8 = vcmask 195712   ;;  %vm1004_vm9 = vcmask 261312   ;;  %vm1201_vm10 = vcmask 523264  }
 0x158   : > { %1490 = vmatprep.subr.bf16.mxu0 %v1917_v15  ;;  %1498 = vmatprep.mubr.msk.bf16.mxu1 %vm1918_vm3, %v1917_v15  ;;  %v471_v20 = vpack.c.bf16 %v2190_v19, %v2190_v19  ;;  %s1922_s19 = smov 96   ;;  %s1923_s30 = smov 80  }
 0x159   : > { %s1924_s28 = smov 72   ;;  %s1925_s24 = smov 88  }
 0x15a   : > { %s1926_s26 = smov 8   ;;  %s1927_s17 = smov 16  }
 0x15b   : > { %v2183_v17 = vld [vmem:[#allocation2] sm:$0xff]  ;;  %1491 = vmatpush3.bf16.msra.mxu0 %v1693_v16  ;;  %s1928_s20 = smov 24   ;;  %p2410_p12 = scmp.ne.s32.totalorder %s2397_s23, 0 }
 0x15c   : > { %659 = vrot.lane.b32.xlu0 %v2183_v17, %s1919_s29  ;;  %v550_v18 = vsel %vm545_vm4, %v2183_v17, 0  ;;  %1502 = vmatprep.subr.bf16.mxu0 %v1917_v15  ;;  %s1929_s25 = smov [#allocation10]  }
 0x15d   : > { %1497 = vmatpush3.bf16.xpose.msra.mxu1 %v550_v18  ;;  %776 = vrot.lane.b32.xlu1 %v2183_v17, %s1920_s9  ;;  %s1810_s22 = sshll.u32 %s1929_s25, 4  ;;  %s1811_s22 = int_to_ptr.vmem [resolvable:$false] %s1810_s22 }
 0x15e   : > { %1508 = vmatprep.subr.bf16.mxu1 %v1917_v15  ;;  %1493 = vmatmul.mubr.msk.bf16.vlgmr.msra.gmra.mrb[0].mxu0 %vm499_vm5, %v471_v20 }
 0x15f   : > { %1504 = vmatprep.mubr.msk.bf16.mxu0 %vm1918_vm3, %v1917_v15 }
 0x1ce   : > { %v660_v25 = vpop.permute.xlu0 %659 }
 0x1cf   : > { %v665_v29 = vsel %vm545_vm4, %v660_v25, 0  ;;  %v777_v30 = vpop.permute.xlu1 %776 }
 0x1d0   : > { %v782_v31 = vsel %vm545_vm4, %v777_v30, 0 }
 0x231   : > { %v537_v22 = vpop.f32.mrb[0].mxu0 }
 0x232   : > { %v538_v23 = vadd.f32 %v1411_v21, %v537_v22  ;;  %v1494_v24 = vpop.f32.mrb[1].mxu0 }
 0x233   : > { %v540_v26 = vpop.f32.mrb[2].mxu0 }
 0x234   : > { %v543_v27 = vpack.c.bf16 %v538_v23, %v538_v23  ;;  %v1495_v28 = vpop.f32.mrb[3].mxu0 }
 0x236   : > { %773 = vrot.lane.b32.xlu1 %v543_v27, %s1920_s9  ;;  %656 = vrot.lane.b32.xlu0 %v543_v27, %s1919_s29  ;;  %s1442_s29 = sshll.u32 %s1896_s13, 1  ;;  %s2408_s13 = sld [smem:[#allocation23_spill]] }
 0x237   : > { %1499 = vmatmul.mubr.msk.bf16.vlgmr.msra.gmra.mrb[0].mxu1 %vm545_vm4, %v543_v27  ;;  %s1282_s9 = sadd.s32 %s1892_s12, %s1442_s29  ;;  %s1271_s12 = scalar_lea.sflag [#allocation6], %s381_s11 }
 0x238   : > { %1509 = vmatpush3.bf16.xpose.msra.mxu1 %v665_v29  ;;  %1510 = vmatprep.mubr.msk.bf16.mxu1 %vm1918_vm3, %v1917_v15  ;;  %s1812_s29 = scalar_lea.vmem %s1811_s22, 256 }
 0x239   : > { %1520 = vmatprep.subr.bf16.mxu1 %v1917_v15 }
 0x23a   : > { %890 = vrot.lane.b32.xlu1 %v543_v27, %s1921_s15  ;;  %893 = vrot.lane.b32.xlu0 %v2183_v17, %s1921_s15 }
 0x2a8   : > { %v657_v32 = vpop.permute.xlu0 %656  ;;  %v774_v35 = vpop.permute.xlu1 %773 }
 0x2a9   : > { %1511 = vmatmul.mubr.msk.bf16.vlgmr.msra.gmra.mrb[4].mxu1 %vm545_vm4, %v657_v32 }
 0x2aa   : > { %1521 = vmatpush3.bf16.xpose.msra.mxu1 %v782_v31  ;;  %1522 = vmatprep.mubr.msk.bf16.mxu1 %vm1918_vm3, %v1917_v15 }
 0x2ab   : > { %1532 = vmatprep.subr.bf16.mxu1 %v1917_v15 }
 0x2ac   : > { %v894_v33 = vpop.permute.xlu0 %893  ;;  %v891_v36 = vpop.permute.xlu1 %890 }
 0x2ad   : > { %v899_v34 = vsel %vm545_vm4, %v894_v33, 0 }
 0x2b1   : > { %1523 = vmatmul.mubr.msk.bf16.vlgmr.msra.gmra.mrb[8].mxu1 %vm545_vm4, %v774_v35 }
 0x2b2   : > { %1533 = vmatpush3.bf16.xpose.msra.mxu1 %v899_v34  ;;  %1534 = vmatprep.mubr.msk.bf16.mxu1 %vm1918_vm3, %v1917_v15 }
 0x2b3   : > { %1544 = vmatprep.subr.bf16.mxu1 %v1917_v15 }
 0x2b9   : > { %1535 = vmatmul.mubr.msk.bf16.vlgmr.msra.gmra.mrb[12].mxu1 %vm545_vm4, %v891_v36 }
 0x2ba   : > { %1548 = vmatprep.mubr.msk.bf16.mxu1 %vm1918_vm3, %v1917_v15 }
 0x30a   : > { %v586_v37 = vpop.f32.mrb[0].mxu1 }
 0x30b   : > { %v592_v38 = vmul.f32 0.35355338, %v586_v37  ;;  %v1500_v39 = vpop.f32.mrb[1].mxu1 }
 0x30c   : > { %v589_v40 = vpop.f32.mrb[2].mxu1 }
 0x30d   : > { %v1501_v41 = vpop.f32.mrb[3].mxu1  ;;  %v594_v42 = vsel %vm593_vm6, %v592_v38, -inf }
 0x30e   : > { %595 = vmax.xlane.f32.xlu0 %v594_v42 }
 0x37c   : > { %v701_v43 = vpop.f32.mrb[4].mxu1 }
 0x37d   : > { %v707_v44 = vmul.f32 0.35355338, %v701_v43  ;;  %v1512_v45 = vpop.f32.mrb[5].mxu1 }
 0x37e   : > { %v704_v46 = vpop.f32.mrb[6].mxu1 }
 0x37f   : > { %v1513_v47 = vpop.f32.mrb[7].mxu1  ;;  %v708_v48 = vsel %vm593_vm6, %v707_v44, -inf }
 0x380   : > { %709 = vmax.xlane.f32.xlu1 %v708_v48  ;;  %v1694_v47 = vld [vmem:[#allocation7] sm:$0xff]   ;;  %v1695_v48 = vld [vmem:[#allocation7 + $0x8] sm:$0xff]  }
 0x381   : > { %1545 = vmatpush3.bf16.msra.mxu1 %v1694_v47 }
 0x382   : > { %1546 = vmatprep.subr.bf16.mxu1 %v1917_v15 }
 0x384   : > { %v818_v49 = vpop.f32.mrb[8].mxu1 }
 0x385   : > { %v824_v50 = vmul.f32 0.35355338, %v818_v49  ;;  %v1524_v51 = vpop.f32.mrb[9].mxu1  ;;  %1547 = vmatpush3.bf16.msra.mxu1 %v1695_v48 }
 0x386   : > { %v821_v52 = vpop.f32.mrb[10].mxu1  ;;  %1560 = vmatprep.subr.bf16.mxu1 %v1917_v15 }
 0x387   : > { %v1525_v53 = vpop.f32.mrb[11].mxu1  ;;  %v825_v54 = vsel %vm593_vm6, %v824_v50, -inf }
 0x388   : > { %826 = vmax.xlane.f32.xlu0 %v825_v54 }
 0x38c   : > { %v935_v55 = vpop.f32.mrb[12].mxu1 }
 0x38d   : > { %v941_v56 = vmul.f32 0.35355338, %v935_v55  ;;  %v1536_v57 = vpop.f32.mrb[13].mxu1 }
 0x38e   : > { %v938_v58 = vpop.f32.mrb[14].mxu1 }
 0x38f   : > { %v1537_v59 = vpop.f32.mrb[15].mxu1  ;;  %v942_v60 = vsel %vm593_vm6, %v941_v56, -inf }
 0x390   : > { %943 = vmax.xlane.f32.xlu0 %v942_v60 }
 0x39b   : > { %v596_v61 = vpop.xlane.xlu0 %595 }
 0x39c   : > { %v597_v62 = vsub.f32 %v592_v38, %v596_v61 }
 0x39e   : > { %v598_v63 = vmul.f32 1.442695, %v597_v62  ;;  %v1423_v62 = vld [vmem:[%s2373_s7 + $0x1] ss:$0 sm:$0xff] }
 0x3a0   : > { %1702 = vpow2.f32 %v598_v63 }
 0x3aa   : > { %v1703_v0 = vpop.eup %1702 }
 0x3ab   : > { %v600_v1 = vsel %vm593_vm6, %v1703_v0, 0.0 }
 0x3ac   : > { %601 = vadd.xlane.f32.xlu1 %v600_v1 }
 0x3bd   : > { %607 = vrot.lane.b32.xlu1 %v2183_v17, %s1922_s19 }
 0x40d   : > { %v710_v2 = vpop.xlane.xlu1 %709 }
 0x40e   : > { %v711_v3 = vsub.f32 %v707_v44, %v710_v2 }
 0x410   : > { %v712_v4 = vmul.f32 1.442695, %v711_v3 }
 0x412   : > { %1704 = vpow2.f32 %v712_v4 }
 0x415   : > { %v827_v5 = vpop.xlane.xlu0 %826 }
 0x416   : > { %v828_v6 = vsub.f32 %v824_v50, %v827_v5 }
 0x418   : > { %v829_v7 = vmul.f32 1.442695, %v828_v6 }
 0x41a   : > { %1706 = vpow2.f32 %v829_v7 }
 0x41c   : > { %v1705_v8 = vpop.eup %1704 }
 0x41d   : > { %v944_v9 = vpop.xlane.xlu0 %943  ;;  %v714_v10 = vsel %vm593_vm6, %v1705_v8, 0.0 }
 0x41e   : > { %v945_v11 = vsub.f32 %v941_v56, %v944_v9  ;;  %715 = vadd.xlane.f32.xlu0 %v714_v10 }
 0x420   : > { %v946_v12 = vmul.f32 1.442695, %v945_v11  ;;  %v1696_v11 = vld [vmem:[#allocation9] sm:$0xff]  }
 0x422   : > { %1708 = vpow2.f32 %v946_v12  ;;  %v1697_v12 = vld [vmem:[#allocation9 + $0x8] sm:$0xff]  }
 0x424   : > { %v1707_v13 = vpop.eup %1706 }
 0x425   : > { %v831_v14 = vsel %vm593_vm6, %v1707_v13, 0.0 }
 0x426   : > { %832 = vadd.xlane.f32.xlu1 %v831_v14 }
 0x42c   : > { %v1709_v16 = vpop.eup %1708 }
 0x42d   : > { %v948_v18 = vsel %vm593_vm6, %v1709_v16, 0.0 }
 0x42e   : > { %949 = vadd.xlane.f32.xlu0 %v948_v18 }
 0x437   : > { %837 = vrot.lane.b32.xlu1 %v2183_v17, %s1923_s30  ;;  %s1443_s30 = sshll.u32 %s1282_s9, 7 }
 0x439   : > { %v602_v20 = vpop.xlane.xlu1 %601 }
 0x43a   : > { %1710 = vrcp.f32 %v602_v20 }
 0x43b   : > { %954 = vrot.lane.b32.xlu1 %v2183_v17, %s1924_s28  ;;  %s1286_s28 = sshll.u32 %s383_s16, 4  ;;  %s2310_s28 = int_to_ptr.vmem [resolvable:$true] %s1286_s28 }
 0x43c   : > { %s1806_s14 = scalar_lea.vmem %s2310_s28, 128  ;;  %p1813_p5 = scmp.lt.s32.totalorder %s2310_s28, %s1811_s22 }
 0x43d   : > { %v608_v21 = vpop.permute.xlu1 %607  ;;  %p1807_p10 = scmp.ne.s32.totalorder %s2310_s28, %s1806_s14  ;;  %p1814_p6 = scmp.lt.s32.totalorder %s1812_s29, %s1806_s14 }
 0x43e   : > { %1503 = vmatpush3.bf16.msra.mxu0 %v608_v21  ;;  %v1427_v21 = vld [vmem:[%s2373_s7 + $0x3] ss:$0 sm:$0xff] }
 0x43f   : > { %1514 = vmatprep.subr.bf16.mxu0 %v1917_v15  ;;  %p1808_p1 = pnand %p1807_p10, %p2410_p12  ;;  %p1815_p7 = por %p1814_p6, %p1813_p5 }
 0x441   : > { %p1809_p4 = pneg %p1808_p1 }
 0x443   : > { %p1816_p9 = pnand %p1815_p7, %p1809_p4 }
 0x444   : > { %v1711_v22 = vpop.eup %1710  ;;  %720 = vrot.lane.b32.xlu0 %v2183_v17, %s1925_s24 }
 0x445   : > { %v604_v23 = vmul.f32 %v1711_v22, %v1703_v0 }
 0x447   : > { %v605_v24 = vpack.c.bf16 %v604_v23, %v604_v23  ;;  %v1428_v23 = vld [vmem:[%s2373_s7 + $0x4] ss:$0 sm:$0xff] }
 0x449   : > { %1505 = vmatmul.mubr.msk.bf16.vlgmr.msra.gmra.mrb[4].mxu0 %vm593_vm6, %v605_v24 }
 0x44a   : > { %1516 = vmatprep.mubr.msk.bf16.mxu0 %vm1918_vm3, %v1917_v15 }
 0x4ab   : > { %v716_v25 = vpop.xlane.xlu0 %715 }
 0x4ac   : > { %1712 = vrcp.f32 %v716_v25 }
 0x4b3   : > { %v833_v26 = vpop.xlane.xlu1 %832 }
 0x4b4   : > { %1714 = vrcp.f32 %v833_v26 }
 0x4b6   : > { %v1713_v27 = vpop.eup %1712 }
 0x4b7   : > { %v718_v29 = vmul.f32 %v1713_v27, %v1705_v8  ;;  %v838_v32 = vpop.permute.xlu1 %837  ;;  %v1700_v27 = vld [vmem:[%s2371_s5 + $0x10] sm:$0xff]  }
 0x4b9   : > { %v719_v31 = vpack.c.bf16 %v718_v29, %v718_v29  ;;  %v1429_v29 = vld [vmem:[%s2374_s8] ss:$0 sm:$0xff] }
 0x4bb   : > { %v950_v28 = vpop.xlane.xlu0 %949  ;;  %v955_v35 = vpop.permute.xlu1 %954 }
 0x4bc   : > { %1716 = vrcp.f32 %v950_v28  ;;  %v1701_v28 = vld [vmem:[%s2371_s5 + $0x18] sm:$0xff]  }
 0x4be   : > { %v1715_v17 = vpop.eup %1714 }
 0x4bf   : > { %v721_v30 = vpop.permute.xlu0 %720  ;;  %v835_v33 = vmul.f32 %v1715_v17, %v1707_v13  ;;  %v1699_v13 = vld [vmem:[%s2371_s5 + $0x8] sm:$0xff]  }
 0x4c0   : > { %1515 = vmatpush3.bf16.msra.mxu0 %v721_v30 }
 0x4c1   : > { %1526 = vmatprep.subr.bf16.mxu0 %v1917_v15  ;;  %v836_v34 = vpack.c.bf16 %v835_v33, %v835_v33 }
 0x4c3   : > { %1517 = vmatmul.mubr.msk.bf16.vlgmr.msra.gmra.mrb[8].mxu0 %vm593_vm6, %v719_v31 }
 0x4c4   : > { %1527 = vmatpush3.bf16.msra.mxu0 %v838_v32  ;;  %1528 = vmatprep.mubr.msk.bf16.mxu0 %vm1918_vm3, %v1917_v15 }
 0x4c5   : > { %1538 = vmatprep.subr.bf16.mxu0 %v1917_v15 }
 0x4c6   : > { %v1717_v36 = vpop.eup %1716 }
 0x4c7   : > { %v952_v37 = vmul.f32 %v1717_v36, %v1709_v16 }
 0x4c9   : > { %v953_v38 = vpack.c.bf16 %v952_v37, %v952_v37 }
 0x4cb   : > { %1529 = vmatmul.mubr.msk.bf16.vlgmr.msra.gmra.mrb[12].mxu0 %vm593_vm6, %v836_v34 }
 0x4cc   : > { %1539 = vmatpush3.bf16.msra.mxu0 %v955_v35  ;;  %1540 = vmatprep.mubr.msk.bf16.mxu0 %vm1918_vm3, %v1917_v15 }
 0x4cd   : > { %1552 = vmatprep.subr.bf16.mxu0 %v1917_v15 }
 0x4d3   : > { %1541 = vmatmul.mubr.msk.bf16.vlgmr.msra.gmra.mrb[16].mxu0 %vm593_vm6, %v953_v38 }
 0x4d4   : > { %1556 = vmatprep.mubr.msk.bf16.mxu0 %vm1918_vm3, %v1917_v15  ;;  %1553 = vmatpush3.bf16.msra.mxu0 %v1696_v11 }
 0x4d5   : > { %1554 = vmatprep.subr.bf16.mxu0 %v1917_v15 }
 0x4d8   : > { %1555 = vmatpush3.bf16.msra.mxu0 %v1697_v12 }
 0x51c   : > { %v647_v39 = vpop.f32.mrb[4].mxu0 }
 0x51d   : > { %653 = vst.msk [vmem:[#allocation3] sm:$0xff] %vm545_vm4, %v647_v39  ;;  %v1506_v40 = vpop.f32.mrb[5].mxu0 }
 0x51e   : > { %v650_v41 = vpop.f32.mrb[6].mxu0 }
 0x51f   : > { %v1507_v42 = vpop.f32.mrb[7].mxu0 }
 0x596   : > { %v760_v43 = vpop.f32.mrb[8].mxu0 }
 0x597   : > { %767 = vrot.lane.b32.xlu0 %v760_v43, %s1926_s26  ;;  %v1518_v44 = vpop.f32.mrb[9].mxu0 }
 0x598   : > { %v763_v45 = vpop.f32.mrb[10].mxu0 }
 0x599   : > { %v1519_v46 = vpop.f32.mrb[11].mxu0 }
 0x59e   : > { %v877_v49 = vpop.f32.mrb[12].mxu0 }
 0x59f   : > { %884 = vrot.lane.b32.xlu1 %v877_v49, %s1927_s17  ;;  %v1530_v50 = vpop.f32.mrb[13].mxu0  ;;  %s2409_s17 = smov %s2408_s13 }
 0x5a0   : > { %v880_v51 = vpop.f32.mrb[14].mxu0 }
 0x5a1   : > { %v1531_v52 = vpop.f32.mrb[15].mxu0 }
 0x5a2   : > { %v1439_v52 = vld [vmem:[%s2373_s7 + $0x5] ss:$0 sm:$0xff] }
 0x5a6   : > { %v994_v53 = vpop.f32.mrb[16].mxu0 }
 0x5a7   : > { %1001 = vrot.lane.b32.xlu0 %v994_v53, %s1928_s20  ;;  %v1542_v54 = vpop.f32.mrb[17].mxu0  ;;  %s2308_s20 = scalar_lea.hbm %s2408_s13, %s1443_s30 }
 0x5a8   : > { %v997_v55 = vpop.f32.mrb[18].mxu0  ;;  %v1440_v54 = vld [vmem:[%s2373_s7 + $0x6] ss:$0 sm:$0xff] }
 0x5a9   : > { %v1543_v56 = vpop.f32.mrb[19].mxu0 }
 0x609   : > { %v768_v57 = vpop.permute.xlu0 %767 }
 0x60a   : > { %771 = vst.msk [vmem:[#allocation3] sm:$0xff] %vm770_vm7, %v768_v57 }
 0x611   : > { %v885_v58 = vpop.permute.xlu1 %884 }
 0x612   : > { %888 = vst.msk [vmem:[#allocation3] sm:$0xff] %vm887_vm8, %v885_v58 }
 0x619   : > { %v1002_v59 = vpop.permute.xlu0 %1001 }
 0x61a   : > { %1005 = vst.msk [vmem:[#allocation3] sm:$0xff] %vm1004_vm9, %v1002_v59 }
 0x621   : > { %v1006_v60 = vld [vmem:[#allocation3] sm:$0xff] }
 0x622   : > { %v1007_v61 = vpack.c.bf16 %v1006_v60, %v1006_v60 }
 0x624   : > { %1549 = vmatmul.mubr.msk.bf16.vlgmr.msra.gmra.mrb[16].mxu1 %vm499_vm5, %v1007_v61 }
 0x625   : > { %1568 = vmatprep.mubr.msk.bf16.mxu1 %vm1918_vm3, %v1917_v15 }
 0x6f7   : > { %v1065_v63 = vpop.f32.mrb[16].mxu1 }
 0x6f8   : > { %v1066_v0 = vadd.f32 %v1423_v62, %v1065_v63  ;;  %v1550_v1 = vpop.f32.mrb[17].mxu1 }
 0x6f9   : > { %v1068_v2 = vpop.f32.mrb[18].mxu1 }
 0x6fa   : > { %v1551_v3 = vpop.f32.mrb[19].mxu1  ;;  %v1071_v4 = vadd.f32 %v1066_v0, %v2190_v19  ;;  %v1698_v19 = vld [vmem:[%s2371_s5] sm:$0xff]  }
 0x6fb   : > { %1561 = vmatpush3.bf16.msra.mxu1 %v1698_v19 }
 0x6fc   : > { %v1072_v5 = vsel %vm499_vm5, %v1071_v4, 0.0  ;;  %1562 = vmatprep.subr.bf16.mxu1 %v1917_v15 }
 0x6fd   : > { %1073 = vadd.xlane.f32.xlu1 %v1072_v5 }
 0x6ff   : > { %1563 = vmatpush3.bf16.msra.mxu1 %v1699_v13 }
 0x700   : > { %1564 = vmatprep.subr.bf16.mxu1 %v1917_v15 }
 0x703   : > { %1565 = vmatpush3.bf16.msra.mxu1 %v1700_v27 }
 0x704   : > { %1566 = vmatprep.subr.bf16.mxu1 %v1917_v15  ;;  %v1433_v15 = vld [vmem:[%s2373_s7 + $0x2] ss:$0 sm:$0xff] }
 0x707   : > { %1567 = vmatpush3.bf16.msra.mxu1 %v1701_v28 }
 0x78a   : > { %v1074_v6 = vpop.xlane.xlu1 %1073 }
 0x78b   : > { %v1076_v7 = vmul.f32 0.03125, %v1074_v6 }
 0x78d   : > { %v1077_v8 = vsub.f32 %v1071_v4, %v1076_v7 }
 0x78f   : > { %v1078_v9 = vmul.f32 %v1077_v8, %v1077_v8 }
 0x791   : > { %v1079_v10 = vsel %vm499_vm5, %v1078_v9, 0.0 }
 0x792   : > { %1080 = vadd.xlane.f32.xlu0 %v1079_v10 }
 0x81f   : > { %v1081_v14 = vpop.xlane.xlu0 %1080 }
 0x820   : > { %v1082_v16 = vmul.f32 0.03125, %v1081_v14 }
 0x822   : > { %v1083_v18 = vadd.f32 1e-05, %v1082_v16 }
 0x824   : > { %1718 = vrsqrt.f32 %v1083_v18 }
 0x82e   : > { %v1719_v20 = vpop.eup %1718 }
 0x82f   : > { %v1085_v22 = vmul.f32 %v1719_v20, %v1077_v8 }
 0x831   : > { %v1090_v24 = vmul.f32 %v1427_v21, %v1085_v22 }
 0x833   : > { %v1095_v25 = vadd.f32 %v1428_v23, %v1090_v24 }
 0x835   : > { %v1096_v26 = vpack.c.bf16 %v1095_v25, %v1095_v25 }
 0x837   : > { %1557 = vmatmul.mubr.msk.bf16.vlgmr.msra.gmra.mrb[20].mxu0 %vm499_vm5, %v1096_v26 }
 0x90a   : > { %v1157_v30 = vpop.f32.mrb[20].mxu0 }
 0x90b   : > { %v1158_v31 = vadd.f32 %v1429_v29, %v1157_v30  ;;  %v1558_v32 = vpop.f32.mrb[21].mxu0 }
 0x90c   : > { %v1160_v17 = vpop.f32.mrb[22].mxu0 }
 0x90d   : > { %v1163_v33 = vmax.f32 %v1158_v31, 0.0  ;;  %v1559_v34 = vpop.f32.mrb[23].mxu0 }
 0x90f   : > { %v1164_v35 = vpack.c.bf16 %v1163_v33, %v1163_v33 }
 0x911   : > { %1569 = vmatmul.mubr.msk.bf16.vlgmr.msra.gmra.mrb[20].mxu1 %vm1201_vm10, %v1164_v35 }
 0x9e4   : > { %v1239_v36 = vpop.f32.mrb[20].mxu1 }
 0x9e5   : > { %v1240_v37 = vadd.f32 %v1433_v15, %v1239_v36  ;;  %v1570_v38 = vpop.f32.mrb[21].mxu1 }
 0x9e6   : > { %v1242_v39 = vpop.f32.mrb[22].mxu1 }
 0x9e7   : > { %v1571_v40 = vpop.f32.mrb[23].mxu1  ;;  %v1245_v41 = vadd.f32 %v1240_v37, %v1095_v25 }
 0x9e9   : > { %v1246_v42 = vsel %vm499_vm5, %v1245_v41, 0.0 }
 0x9ea   : > { %1247 = vadd.xlane.f32.xlu0 %v1246_v42 }
 0xa77   : > { %v1248_v43 = vpop.xlane.xlu0 %1247 }
 0xa78   : > { %v1249_v44 = vmul.f32 0.03125, %v1248_v43 }
 0xa7a   : > { %v1250_v45 = vsub.f32 %v1245_v41, %v1249_v44 }
 0xa7c   : > { %v1251_v46 = vmul.f32 %v1250_v45, %v1250_v45 }
 0xa7e   : > { %v1252_v47 = vsel %vm499_vm5, %v1251_v46, 0.0 }
 0xa7f   : > { %1253 = vadd.xlane.f32.xlu1 %v1252_v47 }
 0xb0c   : > { %v1254_v48 = vpop.xlane.xlu1 %1253 }
 0xb0d   : > { %v1255_v49 = vmul.f32 0.03125, %v1254_v48 }
 0xb0f   : > { %v1256_v50 = vadd.f32 1e-05, %v1255_v49 }
 0xb11   : > { %1720 = vrsqrt.f32 %v1256_v50 }
 0xb1b   : > { %v1721_v51 = vpop.eup %1720 }
 0xb1c   : > { %v1258_v53 = vmul.f32 %v1721_v51, %v1250_v45 }
 0xb1e   : > { %v1263_v55 = vmul.f32 %v1439_v52, %v1258_v53 }
 0xb20   : > { %v1268_v56 = vadd.f32 %v1440_v54, %v1263_v55 }
 0xb22   : > { %1269 = vst.msk [vmem:[%s383_s16] sm:$0xff] %vm499_vm5, %v1268_v56 }
 0xb23   : > { %1819 = shalt.err (!%p1816_p9)
}
 0xb24   : > { %s1820_s11 = scalar_lea.hbm %s2308_s20, 128  ;;  %s1824_s9 = scalar_lea.hbm %s2409_s17, 512 }
 0xb25   : > { %p1821_p11 = scmp.ne.s32.totalorder %s2308_s20, %s1820_s11  ;;  %p1825_p2 = scmp.lt.u32.totalorder %s2308_s20, %s2409_s17 }
 0xb26   : > { %p1826_p0 = scmp.lt.u32.totalorder %s1824_s9, %s1820_s11  ;;  %p1828_p10 = scmp.lt.u32.totalorder %s1820_s11, %s2308_s20 }
 0xb27   : > { %p1822_p13 = pnand %p1821_p11, %p2410_p12 }
 0xb28   : > { %p1827_p8 = por %p1826_p0, %p1825_p2 }
 0xb29   : > { %p1823_p3 = pneg %p1822_p13 }
 0xb2a   : > { %p1829_p1 = por %p1828_p10, %p1827_p8 }
 0xb2c   : > { %p1830_p4 = pnand %p1829_p1, %p1823_p3 }
 0xb2e   : > { %1833 = shalt.err (!%p1830_p4)
}
 0xb2f   : > { %1584 = dma.vmem_to_hbm [thread:$0]  (%p2410_p12), %s2310_s28, 128, %s2308_s20, %s1271_s12  }
 0xb30 PF: > { %s2411_s15 = sld [smem:[#allocation18_spill]]  ;;  %s2412_s19 = sld [smem:[#allocation14_spill]] }
 0xb31   : > { %s2413_s30 = sld [smem:[#allocation21_spill]] }
 0xb36   : > { %p1606_p5 = scmp.ge.s32.totalorder %s2411_s15, 2  ;;  %s1298_s24 = sand.u32 1, %s2412_s19  }
 0xb37   : > { %p2414_p6 = scmp.ne.s32.totalorder %s2413_s30, 0  ;;  %s1299_s26 = scalar_lea.sflag [#allocation6], %s1298_s24 }
 0xb39   : > { %p1597_p7 = pnand %p1606_p5, %p2414_p6 }
 0xb3b   : > { %1875 = dma.done.wait (!%p1597_p7), %s1299_s26, 128  }
 0xb3c   : > { %1877 = vsyncadd (!%p1597_p7), %s1299_s26, 4294967168  ;;  %s24_s16 = sadd.s32 1, %s2411_s15   ;;  %s2415_s13 = sld [smem:[#allocation15_spill]] }
 0xb3d   : > { %p21_p9 = scmp.ge.s32.totalorder %s24_s16, 6   ;;  %s2416_s11 = sld [smem:[#allocation22_spill]] }
 0xb3e   : > { %s2417_s12 = sld [smem:[#allocation16_spill]]  ;;  %s2418_s23 = sld [smem:[#allocation17_spill]] }
 0xb3f   : > { %s2419_s14 = sld [smem:[#allocation19_spill]]  ;;  %s2420_s15 = sld [smem:[#allocation20_spill]] }
 0xb40   : > { %s2421_s30 = smov %s1884_s10  ;;  %23 = sbr.rel (!%p21_p9) target bundleno = 9 (0x9), region = 109 }
 0xb42   : > { %s2422_s10 = smov %s2415_s13 }
 0xb44   : > { %s2423_s13 = smov %s2418_s23 }
 0xb47   :  { %1304 = vsyncpa [#allocation5], 1 }
 0xb48   :  { %1306 = vsyncpa [#allocation5 + $0x1], 1 }
 0xb49   :  { %1307 = vsyncpa [#allocation8], 1 }
 0xb4a   :  { %1308 = vsyncpa [#allocation6], 1 }
 0xb4b   :  { %1310 = vsyncpa [#allocation6 + $0x1], 1 }

// kernel: tpu_custom_call.1
= control target key start
LH: loop header
LB: loop body
LE: loop exit
PB: predicated region body
PF: predicated region fallthrough
CT: control target
= control target key end

     0   :  { %s2366_s0 = inlined_call_operand.vmem [shape: f32[2,16,32], index: 0, kind: input, shape index: {}]   ;;  %s2367_s1 = inlined_call_operand.vmem [shape: bf16[32,32], index: 1, kind: input, shape index: {}]   ;;  %s2368_s2 = inlined_call_operand.hbm [shape: bf16[32,64], index: 2, kind: input, shape index: {}]   ;;  %s2369_s3 = inlined_call_operand.hbm [shape: bf16[32,32], index: 3, kind: input, shape index: {}]   ;;  %s2370_s4 = inlined_call_operand.hbm [shape: bf16[32,64], index: 4, kind: input, shape index: {}]   ;;  %s2371_s5 = inlined_call_operand.vmem [shape: bf16[64,32], index: 5, kind: input, shape index: {}]   ;;  %s2372_s6 = inlined_call_operand.vmem [shape: f32[1,64], index: 6, kind: input, shape index: {}]   ;;  %s2373_s7 = inlined_call_operand.vmem [shape: f32[7,32], index: 7, kind: input, shape index: {}]   ;;  %s2374_s8 = inlined_call_operand.vmem [shape: f32[1,64], index: 8, kind: input, shape index: {}]   ;;  %s2375_s9 = inlined_call_operand.hbm [shape: f32[2,16,32], index: 9, kind: output, shape index: {}]  }
   0x1   :  { %2390 = sst [smem:[#allocation23_spill]] %s2375_s9 }
   0x2   :  { %14 = vsyncpa [#allocation5], 0 }
   0x3   :  { %15 = vsyncpa [#allocation8], 0 }
   0x4   :  { %16 = vsyncpa [#allocation6], 0 }
   0x5   :  { %18 = vsyncpa [#allocation6 + $0x1], 0  ;;  %s1980_s30 = smov 0   ;;  %s1982_s10 = smov 0  }
   0x6   :  { %s1984_s11 = smov 0   ;;  %s1986_s12 = smov 0  }
   0x7   :  { %s1988_s13 = smov 0   ;;  %s1990_s14 = smov 0  }
   0x8   :  { %s1992_s15 = smov 0   ;;  %s1994_s16 = smov 0  }
   0x9 LB: > { %2391 = sst [smem:[#allocation14_spill]] %s1880_s30  ;;  %s1391_s17 = sadd.s32 4294967295, %s1908_s16   ;;  %s1908_s16 = sphi %s1994_s16, %s24_s16   ;;  %s1904_s15 = sphi %s1992_s15, %s2420_s15   ;;  %s1900_s14 = sphi %s1990_s14, %s2419_s14   ;;  %s1896_s13 = sphi %s1988_s13, %s2423_s13   ;;  %s1892_s12 = sphi %s1986_s12, %s2417_s12   ;;  %s1888_s11 = sphi %s1984_s11, %s2416_s11   ;;  %s1884_s10 = sphi %s1982_s10, %s2422_s10   ;;  %s1880_s30 = sphi %s1980_s30, %s2421_s30  }
   0xa   : > { %2392 = sst [smem:[#allocation15_spill]] %s1888_s11  ;;  %s1392_s18 = sadd.s32 4294967294, %s1908_s16  }
   0xb   : > { %2393 = sst [smem:[#allocation16_spill]] %s1900_s14  ;;  %s33_s19 = sadd.s32 1, %s1900_s14 }
   0xc   : > { %2394 = sst [smem:[#allocation17_spill]] %s1904_s15  ;;  %s36_s20 = sadd.s32 1, %s1904_s15 }
   0xd   : > { %2395 = sst [smem:[#allocation18_spill]] %s1908_s16  ;;  %p34_p0 = scmp.ge.s32.totalorder %s33_s19, 2 }
   0xe   : > { %s239_s21 = sadd.s32 1, %s1888_s11  ;;  %p249_p1 = scmp.ne.s32.totalorder %s1888_s11, %s1884_s10 }
   0xf   : > { %p250_p2 = scmp.eq.s32.totalorder %s1391_s17, 3  ;;  %s2425_s19 = smov (%p34_p0, %s33_s19), 0 }
  0x10   : > { %2396 = sst [smem:[#allocation19_spill]] %s2425_s19  ;;  %s2427_s20 = smov (!%p34_p0, %s36_s20), %s1904_s15 }
  0x11   : > { %s235_s22 = ssub.s32 %s1900_s14, %s2425_s19  ;;  %p2032_p3 = por %p250_p2, %p249_p1 }
  0x12   : > { %p38_p4 = scmp.ge.s32.totalorder %s2427_s20, 2  ;;  %p255_p5 = scmp.ne.s32.totalorder %s1884_s10, %s1880_s30 }
  0x13   : > { %s2397_s23 = scalar_select %p2032_p3, 1, 0 }
  0x14   : > { %p256_p6 = scmp.eq.s32.totalorder %s1392_s18, 3  ;;  %p1393_p7 = scmp.ge.s32.totalorder %s1908_s16, 1 }
  0x15   : > { %s2429_s20 = smov (%p38_p4, %s2427_s20), 0  ;;  %p263_p9 = scmp.lt.s32.totalorder %s1908_s16, 5 }
  0x16   : > { %2398 = sst [smem:[#allocation20_spill]] %s2429_s20  ;;  %p2041_p8 = por %p256_p6, %p255_p5 }
  0x17   : > { %s234_s25 = ssub.s32 %s1904_s15, %s2429_s20  ;;  %p2048_p10 = pnand %p1393_p7, %p263_p9 }
  0x18   : > { %s2399_s24 = scalar_select %p2041_p8, 1, 0 }
  0x19   : > { %s236_s26 = sor.u32 %s235_s22, %s234_s25  ;;  %p2052_p12 = scmp.eq.s32.totalorder %s1391_s17, 0 }
  0x1a   : > { %2400 = sst [smem:[#allocation21_spill]] %s2399_s24  ;;  %p237_p11 = scmp.eq.s32.totalorder %s236_s26, 0 }
  0x1b   : > { %s2401_s27 = scalar_select %p2048_p10, 1, 0 }
  0x1c   : > { %s2402_s28 = scalar_select %p2052_p12, 1, 0 }
  0x1d   : > { %p1586_p13 = pneg %p2048_p10  ;;  %s1910_s22 = smov [#allocation7]  }
  0x1e   : > { %s2059_s29 = scalar_select %p237_p11, %s1888_s11, %s239_s21  }
  0x1f   : > { %p2063_p0 = pnand %p2052_p12, %p1586_p13  ;;  %s291_s25 = sshll.u32 %s1910_s22, 4  ;;  %s292_s25 = int_to_ptr.vmem [resolvable:$true] %s291_s25 }
  0x20   : > { %2403 = sst [smem:[#allocation22_spill]] %s2059_s29  ;;  %s1722_s17 = scalar_lea.hbm %s2369_s3, 256 }
  0x21   : > { %p1723_p1 = scmp.ne.s32.totalorder %s2369_s3, %s1722_s17  ;;  %p2075_p2 = pneg %p2063_p0 }
  0x22   : > { %p1729_p6 = scmp.lt.u32.totalorder %s1722_s17, %s2369_s3 }
  0x23   : > { %p1725_p4 = pnand %p2075_p2, %p1723_p1 }
  0x25   : > { %p1726_p5 = pneg %p1725_p4 }
  0x27   : > { %p1731_p7 = pnand %p1729_p6, %p1726_p5 }
  0x29   : > { %1734 = shalt.err (!%p1731_p7)
}
  0x2a   : > { %s1735_s20 = scalar_lea.vmem %s292_s25, 256  ;;  %p1743_p8 = scmp.lt.s32.totalorder %s292_s25, %s292_s25 }
  0x2b   : > { %p1736_p9 = scmp.ne.s32.totalorder %s292_s25, %s1735_s20  ;;  %p1744_p3 = scmp.lt.s32.totalorder %s1735_s20, %s1735_s20 }
  0x2d   : > { %p1738_p11 = pnand %p1736_p9, %p2075_p2  ;;  %p1745_p12 = por %p1744_p3, %p1743_p8 }
  0x2f   : > { %p1739_p13 = pneg %p1738_p11 }
  0x31   : > { %p1746_p10 = pnand %p1745_p12, %p1739_p13 }
  0x33   : > { %1749 = shalt.err (!%p1746_p10)
}
  0x34   : > { %s1911_s15 = smov 64   ;;  %s1912_s19 = smov 4  }
  0x35   : > { %1592 = dma.hbm_to_vmem [thread:$0]  (!%p2063_p0), %s2369_s3, 256, %s292_s25, [#allocation8], %s1911_s15, %s1911_s15, %s1912_s19  }
  0x36   : > { %s1913_s17 = smov [#allocation4]   ;;  %s1914_s29 = smov [#allocation9]  }
  0x37   : > { %s278_s22 = sshll.u32 %s1913_s17, 4  ;;  %s304_s11 = sshll.u32 %s1914_s29, 4  ;;  %s279_s22 = int_to_ptr.vmem [resolvable:$true] %s278_s22  ;;  %s2094_s11 = int_to_ptr.vmem [resolvable:$true] %s304_s11 }
  0x38   : > { %s1750_s30 = scalar_lea.hbm %s2368_s2, 256 }
  0x39   : > { %p1751_p3 = scmp.ne.s32.totalorder %s2368_s2, %s1750_s30  ;;  %p1757_p12 = scmp.lt.u32.totalorder %s1750_s30, %s2368_s2 }
  0x3b   : > { %p1753_p8 = pnand %p1751_p3, %p2075_p2 }
  0x3d   : > { %p1754_p10 = pneg %p1753_p8 }
  0x3f   : > { %p1759_p1 = pnand %p1757_p12, %p1754_p10 }
  0x41   : > { %1762 = shalt.err (!%p1759_p1)
}
  0x42   : > { %s1763_s29 = scalar_lea.vmem %s279_s22, 256  ;;  %p1771_p7 = scmp.lt.s32.totalorder %s279_s22, %s279_s22 }
  0x43   : > { %p1764_p4 = scmp.ne.s32.totalorder %s279_s22, %s1763_s29  ;;  %p1772_p9 = scmp.lt.s32.totalorder %s1763_s29, %s1763_s29 }
  0x45   : > { %p1766_p5 = pnand %p1764_p4, %p2075_p2  ;;  %p1773_p11 = por %p1772_p9, %p1771_p7 }
  0x47   : > { %p1767_p6 = pneg %p1766_p5 }
  0x49   : > { %p1774_p13 = pnand %p1773_p11, %p1767_p6 }
  0x4b   : > { %1777 = shalt.err (!%p1774_p13)
}
  0x4c   : > { %1589 = dma.hbm_to_vmem [thread:$0]  (!%p2063_p0), %s2368_s2, 256, %s279_s22, [#allocation5], %s1911_s15, %s1911_s15, %s1912_s19  }
  0x4d   : > { %s1778_s26 = scalar_lea.hbm %s2370_s4, 256 }
  0x4e   : > { %p1779_p3 = scmp.ne.s32.totalorder %s2370_s4, %s1778_s26  ;;  %p1785_p12 = scmp.lt.u32.totalorder %s1778_s26, %s2370_s4 }
  0x50   : > { %p1781_p8 = pnand %p1779_p3, %p2075_p2 }
  0x52   : > { %p1782_p10 = pneg %p1781_p8 }
  0x54   : > { %p1787_p1 = pnand %p1785_p12, %p1782_p10 }
  0x56   : > { %1790 = shalt.err (!%p1787_p1)
}
  0x57   : > { %s1791_s22 = scalar_lea.vmem %s2094_s11, 256  ;;  %p1799_p7 = scmp.lt.s32.totalorder %s2094_s11, %s2094_s11 }
  0x58   : > { %p1792_p4 = scmp.ne.s32.totalorder %s2094_s11, %s1791_s22  ;;  %p1800_p9 = scmp.lt.s32.totalorder %s1791_s22, %s1791_s22 }
  0x5a   : > { %p1794_p5 = pnand %p1792_p4, %p2075_p2  ;;  %p1801_p11 = por %p1800_p9, %p1799_p7 }
  0x5c   : > { %p1795_p6 = pneg %p1794_p5 }
  0x5e   : > { %p1802_p13 = pnand %p1801_p11, %p1795_p6 }
  0x60   : > { %1805 = shalt.err (!%p1802_p13)
}
  0x61   : > { %1595 = dma.hbm_to_vmem [thread:$0]  (!%p2063_p0), %s2370_s4, 256, %s2094_s11, [#allocation8], %s1911_s15, %s1911_s15, %s1912_s19  }
  0x62   : > { %p2406_p3 = scmp.ne.s32.totalorder %s2401_s27, 0 }
  0x63   : > { %p2407_p2 = scmp.ne.s32.totalorder (!%p2406_p3), %s2402_s28, 0 }
  0x64   : > { %340 = sbr.rel (%p2406_p3) target bundleno = 2864 (0xb30), region = 56 }
  0x6b   : > { %1867 = dma.done.wait (%p2407_p2), [#allocation5], 256  }
  0x6c   : > { %1869 = vsyncadd (%p2407_p2), [#allocation5], 4294967040 }
  0x6d   : > { %1871 = dma.done.wait (%p2407_p2), [#allocation8], 512  }
  0x6e   : > { %1873 = vsyncadd (%p2407_p2), [#allocation8], 4294966784  ;;  %s381_s11 = sand.u32 1, %s1884_s10   ;;  %p384_p0 = scmp.lt.s32.totalorder %s1896_s13, 1 }
  0x6f   : > { %s2157_s27 = sshll.u32 %s381_s11, 3  ;;  %p1405_p8 = scmp.ne.s32.totalorder %s1892_s12, 0 }
  0x70   : > { %s385_s18 = scalar_select %p384_p0, %s1896_s13, 1 }
  0x71   : > { %s383_s16 = scalar_lea.vmem [#allocation10], %s2157_s27  ;;  %393 = sbr.rel (%p1405_p8) target bundleno = 341 (0x155), region = 72  ;;  %v1690_v0 = vld [vmem:[#allocation4] sm:$0xff] (!%p1405_p8)   ;;  %v1915_v1 = vmov (!%p1405_p8), 0.0   ;;  %v1691_v2 = vld [vmem:[#allocation4 + $0x8] sm:$0xff] (!%p1405_p8)   ;;  %vm1916_vm0 = vmmov (!%p1405_p8), 0  }
  0x72   : > { %s1446_s21 = sshll.u32 %s385_s18, 4  ;;  %1480 = vmatprep.subr.bf16.mxu0 (!%p1405_p8), %v1915_v1  ;;  %1484 = vmatprep.mubr.msk.bf16.mxu0 (!%p1405_p8), %vm1916_vm0, %v1915_v1  ;;  %vm420_vm1 = vcmask (!%p1405_p8), 261120   ;;  %v1406_v6 = vld [vmem:[%s2372_s6] ss:$0 sm:$0xff] (!%p1405_p8)  ;;  %vm466_vm2 = vcmask (!%p1405_p8), 523264  }
  0x73   : > { %s2163_s30 = scalar_lea.vmem %s2366_s0, %s1446_s21  ;;  %1481 = vmatpush3.bf16.msra.mxu0 (!%p1405_p8), %v1690_v0 }
  0x74   : > { %v394_v3 = vld [vmem:[%s2163_s30] sm:$0xff] (!%p1405_p8)  ;;  %v395_v4 = vld [vmem:[%s2163_s30 + $0x8] sm:$0xff] (!%p1405_p8)  ;;  %1482 = vmatprep.subr.bf16.mxu0 (!%p1405_p8), %v1915_v1 }
  0x75   : > { %v396_v5 = vpack.c.bf16 (!%p1405_p8), %v395_v4, %v394_v3 }
  0x77   : > { %1483 = vmatpush3.bf16.msra.mxu0 (!%p1405_p8), %v1691_v2 }
  0x7a   : > { %1485 = vmatmul.mubr.msk.bf16.vlgmr.msra.gmra.mrb[0].mxu0 %vm420_vm1, %v396_v5 }
 0x14d   : > { %v458_v7 = vpop.f32.mrb[0].mxu0 }
 0x14e   : > { %v1486_v8 = vpop.f32.mrb[1].mxu0  ;;  %v459_v10 = vadd.f32 %v1406_v6, %v458_v7 }
 0x14f   : > { %v461_v9 = vpop.f32.mrb[2].mxu0 }
 0x150   : > { %v462_v11 = vadd.f32 %v1406_v6, %v461_v9  ;;  %v1487_v12 = vpop.f32.mrb[3].mxu0 }
 0x152   : > { %v465_v13 = vpack.c.bf16 %v462_v11, %v459_v10 }
 0x154   : > { %467 = vst.msk [vmem:[#allocation2] sm:$0xff] %vm466_vm2, %v465_v13 }
 0x155 PF: > { %v1692_v14 = vld [vmem:[%s2367_s1] sm:$0xff]   ;;  %v1917_v15 = vmov 0.0   ;;  %v1693_v16 = vld [vmem:[%s2367_s1 + $0x8] sm:$0xff]   ;;  %vm1918_vm3 = vmmov 0   ;;  %s1410_s25 = sshll.u32 %s1892_s12, 3  ;;  %vm545_vm4 = vcmask 64512  }
 0x156   : > { %1488 = vmatprep.subr.bf16.mxu0 %v1917_v15  ;;  %1496 = vmatprep.subr.bf16.mxu1 %v1917_v15  ;;  %s469_s22 = scalar_lea.vmem %s2163_s30, %s1410_s25  ;;  %s1919_s29 = smov 120   ;;  %vm499_vm5 = vcmask 261120   ;;  %v1411_v21 = vld [vmem:[%s2373_s7] ss:$0 sm:$0xff]  ;;  %vm593_vm6 = vcmask 130048   ;;  %vm770_vm7 = vcmask 130112  }
 0x157   : > { %1489 = vmatpush3.bf16.msra.mxu0 %v1692_v14  ;;  %1492 = vmatprep.mubr.msk.bf16.mxu0 %vm1918_vm3, %v1917_v15  ;;  %v2190_v19 = vld [vmem:[%s469_s22] sm:$0xff]  ;;  %s1920_s9 = smov 112   ;;  %s1921_s15 = smov 104   ;;  %vm887_vm8 = vcmask 195712   ;;  %vm1004_vm9 = vcmask 261312   ;;  %vm1201_vm10 = vcmask 523264  }
 0x158   : > { %1490 = vmatprep.subr.bf16.mxu0 %v1917_v15  ;;  %1498 = vmatprep.mubr.msk.bf16.mxu1 %vm1918_vm3, %v1917_v15  ;;  %v471_v20 = vpack.c.bf16 %v2190_v19, %v2190_v19  ;;  %s1922_s19 = smov 96   ;;  %s1923_s30 = smov 80  }
 0x159   : > { %s1924_s28 = smov 72   ;;  %s1925_s24 = smov 88  }
 0x15a   : > { %s1926_s26 = smov 8   ;;  %s1927_s17 = smov 16  }
 0x15b   : > { %v2183_v17 = vld [vmem:[#allocation2] sm:$0xff]  ;;  %1491 = vmatpush3.bf16.msra.mxu0 %v1693_v16  ;;  %s1928_s20 = smov 24   ;;  %p2410_p12 = scmp.ne.s32.totalorder %s2397_s23, 0 }
 0x15c   : > { %659 = vrot.lane.b32.xlu0 %v2183_v17, %s1919_s29  ;;  %v550_v18 = vsel %vm545_vm4, %v2183_v17, 0  ;;  %1502 = vmatprep.subr.bf16.mxu0 %v1917_v15  ;;  %s1929_s25 = smov [#allocation10]  }
 0x15d   : > { %1497 = vmatpush3.bf16.xpose.msra.mxu1 %v550_v18  ;;  %776 = vrot.lane.b32.xlu1 %v2183_v17, %s1920_s9  ;;  %s1810_s22 = sshll.u32 %s1929_s25, 4  ;;  %s1811_s22 = int_to_ptr.vmem [resolvable:$false] %s1810_s22 }
 0x15e   : > { %1508 = vmatprep.subr.bf16.mxu1 %v1917_v15  ;;  %1493 = vmatmul.mubr.msk.bf16.vlgmr.msra.gmra.mrb[0].mxu0 %vm499_vm5, %v471_v20 }
 0x15f   : > { %1504 = vmatprep.mubr.msk.bf16.mxu0 %vm1918_vm3, %v1917_v15 }
 0x1ce   : > { %v660_v25 = vpop.permute.xlu0 %659 }
 0x1cf   : > { %v665_v29 = vsel %vm545_vm4, %v660_v25, 0  ;;  %v777_v30 = vpop.permute.xlu1 %776 }
 0x1d0   : > { %v782_v31 = vsel %vm545_vm4, %v777_v30, 0 }
 0x231   : > { %v537_v22 = vpop.f32.mrb[0].mxu0 }
 0x232   : > { %v538_v23 = vadd.f32 %v1411_v21, %v537_v22  ;;  %v1494_v24 = vpop.f32.mrb[1].mxu0 }
 0x233   : > { %v540_v26 = vpop.f32.mrb[2].mxu0 }
 0x234   : > { %v543_v27 = vpack.c.bf16 %v538_v23, %v538_v23  ;;  %v1495_v28 = vpop.f32.mrb[3].mxu0 }
 0x236   : > { %773 = vrot.lane.b32.xlu1 %v543_v27, %s1920_s9  ;;  %656 = vrot.lane.b32.xlu0 %v543_v27, %s1919_s29  ;;  %s1442_s29 = sshll.u32 %s1896_s13, 1  ;;  %s2408_s13 = sld [smem:[#allocation23_spill]] }
 0x237   : > { %1499 = vmatmul.mubr.msk.bf16.vlgmr.msra.gmra.mrb[0].mxu1 %vm545_vm4, %v543_v27  ;;  %s1282_s9 = sadd.s32 %s1892_s12, %s1442_s29  ;;  %s1271_s12 = scalar_lea.sflag [#allocation6], %s381_s11 }
 0x238   : > { %1509 = vmatpush3.bf16.xpose.msra.mxu1 %v665_v29  ;;  %1510 = vmatprep.mubr.msk.bf16.mxu1 %vm1918_vm3, %v1917_v15  ;;  %s1812_s29 = scalar_lea.vmem %s1811_s22, 256 }
 0x239   : > { %1520 = vmatprep.subr.bf16.mxu1 %v1917_v15 }
 0x23a   : > { %890 = vrot.lane.b32.xlu1 %v543_v27, %s1921_s15  ;;  %893 = vrot.lane.b32.xlu0 %v2183_v17, %s1921_s15 }
 0x2a8   : > { %v657_v32 = vpop.permute.xlu0 %656  ;;  %v774_v35 = vpop.permute.xlu1 %773 }
 0x2a9   : > { %1511 = vmatmul.mubr.msk.bf16.vlgmr.msra.gmra.mrb[4].mxu1 %vm545_vm4, %v657_v32 }
 0x2aa   : > { %1521 = vmatpush3.bf16.xpose.msra.mxu1 %v782_v31  ;;  %1522 = vmatprep.mubr.msk.bf16.mxu1 %vm1918_vm3, %v1917_v15 }
 0x2ab   : > { %1532 = vmatprep.subr.bf16.mxu1 %v1917_v15 }
 0x2ac   : > { %v894_v33 = vpop.permute.xlu0 %893  ;;  %v891_v36 = vpop.permute.xlu1 %890 }
 0x2ad   : > { %v899_v34 = vsel %vm545_vm4, %v894_v33, 0 }
 0x2b1   : > { %1523 = vmatmul.mubr.msk.bf16.vlgmr.msra.gmra.mrb[8].mxu1 %vm545_vm4, %v774_v35 }
 0x2b2   : > { %1533 = vmatpush3.bf16.xpose.msra.mxu1 %v899_v34  ;;  %1534 = vmatprep.mubr.msk.bf16.mxu1 %vm1918_vm3, %v1917_v15 }
 0x2b3   : > { %1544 = vmatprep.subr.bf16.mxu1 %v1917_v15 }
 0x2b9   : > { %1535 = vmatmul.mubr.msk.bf16.vlgmr.msra.gmra.mrb[12].mxu1 %vm545_vm4, %v891_v36 }
 0x2ba   : > { %1548 = vmatprep.mubr.msk.bf16.mxu1 %vm1918_vm3, %v1917_v15 }
 0x30a   : > { %v586_v37 = vpop.f32.mrb[0].mxu1 }
 0x30b   : > { %v592_v38 = vmul.f32 0.35355338, %v586_v37  ;;  %v1500_v39 = vpop.f32.mrb[1].mxu1 }
 0x30c   : > { %v589_v40 = vpop.f32.mrb[2].mxu1 }
 0x30d   : > { %v1501_v41 = vpop.f32.mrb[3].mxu1  ;;  %v594_v42 = vsel %vm593_vm6, %v592_v38, -inf }
 0x30e   : > { %595 = vmax.xlane.f32.xlu0 %v594_v42 }
 0x37c   : > { %v701_v43 = vpop.f32.mrb[4].mxu1 }
 0x37d   : > { %v707_v44 = vmul.f32 0.35355338, %v701_v43  ;;  %v1512_v45 = vpop.f32.mrb[5].mxu1 }
 0x37e   : > { %v704_v46 = vpop.f32.mrb[6].mxu1 }
 0x37f   : > { %v1513_v47 = vpop.f32.mrb[7].mxu1  ;;  %v708_v48 = vsel %vm593_vm6, %v707_v44, -inf }
 0x380   : > { %709 = vmax.xlane.f32.xlu1 %v708_v48  ;;  %v1694_v47 = vld [vmem:[#allocation7] sm:$0xff]   ;;  %v1695_v48 = vld [vmem:[#allocation7 + $0x8] sm:$0xff]  }
 0x381   : > { %1545 = vmatpush3.bf16.msra.mxu1 %v1694_v47 }
 0x382   : > { %1546 = vmatprep.subr.bf16.mxu1 %v1917_v15 }
 0x384   : > { %v818_v49 = vpop.f32.mrb[8].mxu1 }
 0x385   : > { %v824_v50 = vmul.f32 0.35355338, %v818_v49  ;;  %v1524_v51 = vpop.f32.mrb[9].mxu1  ;;  %1547 = vmatpush3.bf16.msra.mxu1 %v1695_v48 }
 0x386   : > { %v821_v52 = vpop.f32.mrb[10].mxu1  ;;  %1560 = vmatprep.subr.bf16.mxu1 %v1917_v15 }
 0x387   : > { %v1525_v53 = vpop.f32.mrb[11].mxu1  ;;  %v825_v54 = vsel %vm593_vm6, %v824_v50, -inf }
 0x388   : > { %826 = vmax.xlane.f32.xlu0 %v825_v54 }
 0x38c   : > { %v935_v55 = vpop.f32.mrb[12].mxu1 }
 0x38d   : > { %v941_v56 = vmul.f32 0.35355338, %v935_v55  ;;  %v1536_v57 = vpop.f32.mrb[13].mxu1 }
 0x38e   : > { %v938_v58 = vpop.f32.mrb[14].mxu1 }
 0x38f   : > { %v1537_v59 = vpop.f32.mrb[15].mxu1  ;;  %v942_v60 = vsel %vm593_vm6, %v941_v56, -inf }
 0x390   : > { %943 = vmax.xlane.f32.xlu0 %v942_v60 }
 0x39b   : > { %v596_v61 = vpop.xlane.xlu0 %595 }
 0x39c   : > { %v597_v62 = vsub.f32 %v592_v38, %v596_v61 }
 0x39e   : > { %v598_v63 = vmul.f32 1.442695, %v597_v62  ;;  %v1423_v62 = vld [vmem:[%s2373_s7 + $0x1] ss:$0 sm:$0xff] }
 0x3a0   : > { %1702 = vpow2.f32 %v598_v63 }
 0x3aa   : > { %v1703_v0 = vpop.eup %1702 }
 0x3ab   : > { %v600_v1 = vsel %vm593_vm6, %v1703_v0, 0.0 }
 0x3ac   : > { %601 = vadd.xlane.f32.xlu1 %v600_v1 }
 0x3bd   : > { %607 = vrot.lane.b32.xlu1 %v2183_v17, %s1922_s19 }
 0x40d   : > { %v710_v2 = vpop.xlane.xlu1 %709 }
 0x40e   : > { %v711_v3 = vsub.f32 %v707_v44, %v710_v2 }
 0x410   : > { %v712_v4 = vmul.f32 1.442695, %v711_v3 }
 0x412   : > { %1704 = vpow2.f32 %v712_v4 }
 0x415   : > { %v827_v5 = vpop.xlane.xlu0 %826 }
 0x416   : > { %v828_v6 = vsub.f32 %v824_v50, %v827_v5 }
 0x418   : > { %v829_v7 = vmul.f32 1.442695, %v828_v6 }
 0x41a   : > { %1706 = vpow2.f32 %v829_v7 }
 0x41c   : > { %v1705_v8 = vpop.eup %1704 }
 0x41d   : > { %v944_v9 = vpop.xlane.xlu0 %943  ;;  %v714_v10 = vsel %vm593_vm6, %v1705_v8, 0.0 }
 0x41e   : > { %v945_v11 = vsub.f32 %v941_v56, %v944_v9  ;;  %715 = vadd.xlane.f32.xlu0 %v714_v10 }
 0x420   : > { %v946_v12 = vmul.f32 1.442695, %v945_v11  ;;  %v1696_v11 = vld [vmem:[#allocation9] sm:$0xff]  }
 0x422   : > { %1708 = vpow2.f32 %v946_v12  ;;  %v1697_v12 = vld [vmem:[#allocation9 + $0x8] sm:$0xff]  }
 0x424   : > { %v1707_v13 = vpop.eup %1706 }
 0x425   : > { %v831_v14 = vsel %vm593_vm6, %v1707_v13, 0.0 }
 0x426   : > { %832 = vadd.xlane.f32.xlu1 %v831_v14 }
 0x42c   : > { %v1709_v16 = vpop.eup %1708 }
 0x42d   : > { %v948_v18 = vsel %vm593_vm6, %v1709_v16, 0.0 }
 0x42e   : > { %949 = vadd.xlane.f32.xlu0 %v948_v18 }
 0x437   : > { %837 = vrot.lane.b32.xlu1 %v2183_v17, %s1923_s30  ;;  %s1443_s30 = sshll.u32 %s1282_s9, 7 }
 0x439   : > { %v602_v20 = vpop.xlane.xlu1 %601 }
 0x43a   : > { %1710 = vrcp.f32 %v602_v20 }
 0x43b   : > { %954 = vrot.lane.b32.xlu1 %v2183_v17, %s1924_s28  ;;  %s1286_s28 = sshll.u32 %s383_s16, 4  ;;  %s2310_s28 = int_to_ptr.vmem [resolvable:$true] %s1286_s28 }
 0x43c   : > { %s1806_s14 = scalar_lea.vmem %s2310_s28, 128  ;;  %p1813_p5 = scmp.lt.s32.totalorder %s2310_s28, %s1811_s22 }
 0x43d   : > { %v608_v21 = vpop.permute.xlu1 %607  ;;  %p1807_p10 = scmp.ne.s32.totalorder %s2310_s28, %s1806_s14  ;;  %p1814_p6 = scmp.lt.s32.totalorder %s1812_s29, %s1806_s14 }
 0x43e   : > { %1503 = vmatpush3.bf16.msra.mxu0 %v608_v21  ;;  %v1427_v21 = vld [vmem:[%s2373_s7 + $0x3] ss:$0 sm:$0xff] }
 0x43f   : > { %1514 = vmatprep.subr.bf16.mxu0 %v1917_v15  ;;  %p1808_p1 = pnand %p1807_p10, %p2410_p12  ;;  %p1815_p7 = por %p1814_p6, %p1813_p5 }
 0x441   : > { %p1809_p4 = pneg %p1808_p1 }
 0x443   : > { %p1816_p9 = pnand %p1815_p7, %p1809_p4 }
 0x444   : > { %v1711_v22 = vpop.eup %1710  ;;  %720 = vrot.lane.b32.xlu0 %v2183_v17, %s1925_s24 }
 0x445   : > { %v604_v23 = vmul.f32 %v1711_v22, %v1703_v0 }
 0x447   : > { %v605_v24 = vpack.c.bf16 %v604_v23, %v604_v23  ;;  %v1428_v23 = vld [vmem:[%s2373_s7 + $0x4] ss:$0 sm:$0xff] }
 0x449   : > { %1505 = vmatmul.mubr.msk.bf16.vlgmr.msra.gmra.mrb[4].mxu0 %vm593_vm6, %v605_v24 }
 0x44a   : > { %1516 = vmatprep.mubr.msk.bf16.mxu0 %vm1918_vm3, %v1917_v15 }
 0x4ab   : > { %v716_v25 = vpop.xlane.xlu0 %715 }
 0x4ac   : > { %1712 = vrcp.f32 %v716_v25 }
 0x4b3   : > { %v833_v26 = vpop.xlane.xlu1 %832 }
 0x4b4   : > { %1714 = vrcp.f32 %v833_v26 }
 0x4b6   : > { %v1713_v27 = vpop.eup %1712 }
 0x4b7   : > { %v718_v29 = vmul.f32 %v1713_v27, %v1705_v8  ;;  %v838_v32 = vpop.permute.xlu1 %837  ;;  %v1700_v27 = vld [vmem:[%s2371_s5 + $0x10] sm:$0xff]  }
 0x4b9   : > { %v719_v31 = vpack.c.bf16 %v718_v29, %v718_v29  ;;  %v1429_v29 = vld [vmem:[%s2374_s8] ss:$0 sm:$0xff] }
 0x4bb   : > { %v950_v28 = vpop.xlane.xlu0 %949  ;;  %v955_v35 = vpop.permute.xlu1 %954 }
 0x4bc   : > { %1716 = vrcp.f32 %v950_v28  ;;  %v1701_v28 = vld [vmem:[%s2371_s5 + $0x18] sm:$0xff]  }
 0x4be   : > { %v1715_v17 = vpop.eup %1714 }
 0x4bf   : > { %v721_v30 = vpop.permute.xlu0 %720  ;;  %v835_v33 = vmul.f32 %v1715_v17, %v1707_v13  ;;  %v1699_v13 = vld [vmem:[%s2371_s5 + $0x8] sm:$0xff]  }
 0x4c0   : > { %1515 = vmatpush3.bf16.msra.mxu0 %v721_v30 }
 0x4c1   : > { %1526 = vmatprep.subr.bf16.mxu0 %v1917_v15  ;;  %v836_v34 = vpack.c.bf16 %v835_v33, %v835_v33 }
 0x4c3   : > { %1517 = vmatmul.mubr.msk.bf16.vlgmr.msra.gmra.mrb[8].mxu0 %vm593_vm6, %v719_v31 }
 0x4c4   : > { %1527 = vmatpush3.bf16.msra.mxu0 %v838_v32  ;;  %1528 = vmatprep.mubr.msk.bf16.mxu0 %vm1918_vm3, %v1917_v15 }
 0x4c5   : > { %1538 = vmatprep.subr.bf16.mxu0 %v1917_v15 }
 0x4c6   : > { %v1717_v36 = vpop.eup %1716 }
 0x4c7   : > { %v952_v37 = vmul.f32 %v1717_v36, %v1709_v16 }
 0x4c9   : > { %v953_v38 = vpack.c.bf16 %v952_v37, %v952_v37 }
 0x4cb   : > { %1529 = vmatmul.mubr.msk.bf16.vlgmr.msra.gmra.mrb[12].mxu0 %vm593_vm6, %v836_v34 }
 0x4cc   : > { %1539 = vmatpush3.bf16.msra.mxu0 %v955_v35  ;;  %1540 = vmatprep.mubr.msk.bf16.mxu0 %vm1918_vm3, %v1917_v15 }
 0x4cd   : > { %1552 = vmatprep.subr.bf16.mxu0 %v1917_v15 }
 0x4d3   : > { %1541 = vmatmul.mubr.msk.bf16.vlgmr.msra.gmra.mrb[16].mxu0 %vm593_vm6, %v953_v38 }
 0x4d4   : > { %1556 = vmatprep.mubr.msk.bf16.mxu0 %vm1918_vm3, %v1917_v15  ;;  %1553 = vmatpush3.bf16.msra.mxu0 %v1696_v11 }
 0x4d5   : > { %1554 = vmatprep.subr.bf16.mxu0 %v1917_v15 }
 0x4d8   : > { %1555 = vmatpush3.bf16.msra.mxu0 %v1697_v12 }
 0x51c   : > { %v647_v39 = vpop.f32.mrb[4].mxu0 }
 0x51d   : > { %653 = vst.msk [vmem:[#allocation3] sm:$0xff] %vm545_vm4, %v647_v39  ;;  %v1506_v40 = vpop.f32.mrb[5].mxu0 }
 0x51e   : > { %v650_v41 = vpop.f32.mrb[6].mxu0 }
 0x51f   : > { %v1507_v42 = vpop.f32.mrb[7].mxu0 }
 0x596   : > { %v760_v43 = vpop.f32.mrb[8].mxu0 }
 0x597   : > { %767 = vrot.lane.b32.xlu0 %v760_v43, %s1926_s26  ;;  %v1518_v44 = vpop.f32.mrb[9].mxu0 }
 0x598   : > { %v763_v45 = vpop.f32.mrb[10].mxu0 }
 0x599   : > { %v1519_v46 = vpop.f32.mrb[11].mxu0 }
 0x59e   : > { %v877_v49 = vpop.f32.mrb[12].mxu0 }
 0x59f   : > { %884 = vrot.lane.b32.xlu1 %v877_v49, %s1927_s17  ;;  %v1530_v50 = vpop.f32.mrb[13].mxu0  ;;  %s2409_s17 = smov %s2408_s13 }
 0x5a0   : > { %v880_v51 = vpop.f32.mrb[14].mxu0 }
 0x5a1   : > { %v1531_v52 = vpop.f32.mrb[15].mxu0 }
 0x5a2   : > { %v1439_v52 = vld [vmem:[%s2373_s7 + $0x5] ss:$0 sm:$0xff] }
 0x5a6   : > { %v994_v53 = vpop.f32.mrb[16].mxu0 }
 0x5a7   : > { %1001 = vrot.lane.b32.xlu0 %v994_v53, %s1928_s20  ;;  %v1542_v54 = vpop.f32.mrb[17].mxu0  ;;  %s2308_s20 = scalar_lea.hbm %s2408_s13, %s1443_s30 }
 0x5a8   : > { %v997_v55 = vpop.f32.mrb[18].mxu0  ;;  %v1440_v54 = vld [vmem:[%s2373_s7 + $0x6] ss:$0 sm:$0xff] }
 0x5a9   : > { %v1543_v56 = vpop.f32.mrb[19].mxu0 }
 0x609   : > { %v768_v57 = vpop.permute.xlu0 %767 }
 0x60a   : > { %771 = vst.msk [vmem:[#allocation3] sm:$0xff] %vm770_vm7, %v768_v57 }
 0x611   : > { %v885_v58 = vpop.permute.xlu1 %884 }
 0x612   : > { %888 = vst.msk [vmem:[#allocation3] sm:$0xff] %vm887_vm8, %v885_v58 }
 0x619   : > { %v1002_v59 = vpop.permute.xlu0 %1001 }
 0x61a   : > { %1005 = vst.msk [vmem:[#allocation3] sm:$0xff] %vm1004_vm9, %v1002_v59 }
 0x621   : > { %v1006_v60 = vld [vmem:[#allocation3] sm:$0xff] }
 0x622   : > { %v1007_v61 = vpack.c.bf16 %v1006_v60, %v1006_v60 }
 0x624   : > { %1549 = vmatmul.mubr.msk.bf16.vlgmr.msra.gmra.mrb[16].mxu1 %vm499_vm5, %v1007_v61 }
 0x625   : > { %1568 = vmatprep.mubr.msk.bf16.mxu1 %vm1918_vm3, %v1917_v15 }
 0x6f7   : > { %v1065_v63 = vpop.f32.mrb[16].mxu1 }
 0x6f8   : > { %v1066_v0 = vadd.f32 %v1423_v62, %v1065_v63  ;;  %v1550_v1 = vpop.f32.mrb[17].mxu1 }
 0x6f9   : > { %v1068_v2 = vpop.f32.mrb[18].mxu1 }
 0x6fa   : > { %v1551_v3 = vpop.f32.mrb[19].mxu1  ;;  %v1071_v4 = vadd.f32 %v1066_v0, %v2190_v19  ;;  %v1698_v19 = vld [vmem:[%s2371_s5] sm:$0xff]  }
 0x6fb   : > { %1561 = vmatpush3.bf16.msra.mxu1 %v1698_v19 }
 0x6fc   : > { %v1072_v5 = vsel %vm499_vm5, %v1071_v4, 0.0  ;;  %1562 = vmatprep.subr.bf16.mxu1 %v1917_v15 }
 0x6fd   : > { %1073 = vadd.xlane.f32.xlu1 %v1072_v5 }
 0x6ff   : > { %1563 = vmatpush3.bf16.msra.mxu1 %v1699_v13 }
 0x700   : > { %1564 = vmatprep.subr.bf16.mxu1 %v1917_v15 }
 0x703   : > { %1565 = vmatpush3.bf16.msra.mxu1 %v1700_v27 }
 0x704   : > { %1566 = vmatprep.subr.bf16.mxu1 %v1917_v15  ;;  %v1433_v15 = vld [vmem:[%s2373_s7 + $0x2] ss:$0 sm:$0xff] }
 0x707   : > { %1567 = vmatpush3.bf16.msra.mxu1 %v1701_v28 }
 0x78a   : > { %v1074_v6 = vpop.xlane.xlu1 %1073 }
 0x78b   : > { %v1076_v7 = vmul.f32 0.03125, %v1074_v6 }
 0x78d   : > { %v1077_v8 = vsub.f32 %v1071_v4, %v1076_v7 }
 0x78f   : > { %v1078_v9 = vmul.f32 %v1077_v8, %v1077_v8 }
 0x791   : > { %v1079_v10 = vsel %vm499_vm5, %v1078_v9, 0.0 }
 0x792   : > { %1080 = vadd.xlane.f32.xlu0 %v1079_v10 }
 0x81f   : > { %v1081_v14 = vpop.xlane.xlu0 %1080 }
 0x820   : > { %v1082_v16 = vmul.f32 0.03125, %v1081_v14 }
 0x822   : > { %v1083_v18 = vadd.f32 1e-05, %v1082_v16 }
 0x824   : > { %1718 = vrsqrt.f32 %v1083_v18 }
 0x82e   : > { %v1719_v20 = vpop.eup %1718 }
 0x82f   : > { %v1085_v22 = vmul.f32 %v1719_v20, %v1077_v8 }
 0x831   : > { %v1090_v24 = vmul.f32 %v1427_v21, %v1085_v22 }
 0x833   : > { %v1095_v25 = vadd.f32 %v1428_v23, %v1090_v24 }
 0x835   : > { %v1096_v26 = vpack.c.bf16 %v1095_v25, %v1095_v25 }
 0x837   : > { %1557 = vmatmul.mubr.msk.bf16.vlgmr.msra.gmra.mrb[20].mxu0 %vm499_vm5, %v1096_v26 }
 0x90a   : > { %v1157_v30 = vpop.f32.mrb[20].mxu0 }
 0x90b   : > { %v1158_v31 = vadd.f32 %v1429_v29, %v1157_v30  ;;  %v1558_v32 = vpop.f32.mrb[21].mxu0 }
 0x90c   : > { %v1160_v17 = vpop.f32.mrb[22].mxu0 }
 0x90d   : > { %v1163_v33 = vmax.f32 %v1158_v31, 0.0  ;;  %v1559_v34 = vpop.f32.mrb[23].mxu0 }
 0x90f   : > { %v1164_v35 = vpack.c.bf16 %v1163_v33, %v1163_v33 }
 0x911   : > { %1569 = vmatmul.mubr.msk.bf16.vlgmr.msra.gmra.mrb[20].mxu1 %vm1201_vm10, %v1164_v35 }
 0x9e4   : > { %v1239_v36 = vpop.f32.mrb[20].mxu1 }
 0x9e5   : > { %v1240_v37 = vadd.f32 %v1433_v15, %v1239_v36  ;;  %v1570_v38 = vpop.f32.mrb[21].mxu1 }
 0x9e6   : > { %v1242_v39 = vpop.f32.mrb[22].mxu1 }
 0x9e7   : > { %v1571_v40 = vpop.f32.mrb[23].mxu1  ;;  %v1245_v41 = vadd.f32 %v1240_v37, %v1095_v25 }
 0x9e9   : > { %v1246_v42 = vsel %vm499_vm5, %v1245_v41, 0.0 }
 0x9ea   : > { %1247 = vadd.xlane.f32.xlu0 %v1246_v42 }
 0xa77   : > { %v1248_v43 = vpop.xlane.xlu0 %1247 }
 0xa78   : > { %v1249_v44 = vmul.f32 0.03125, %v1248_v43 }
 0xa7a   : > { %v1250_v45 = vsub.f32 %v1245_v41, %v1249_v44 }
 0xa7c   : > { %v1251_v46 = vmul.f32 %v1250_v45, %v1250_v45 }
 0xa7e   : > { %v1252_v47 = vsel %vm499_vm5, %v1251_v46, 0.0 }
 0xa7f   : > { %1253 = vadd.xlane.f32.xlu1 %v1252_v47 }
 0xb0c   : > { %v1254_v48 = vpop.xlane.xlu1 %1253 }
 0xb0d   : > { %v1255_v49 = vmul.f32 0.03125, %v1254_v48 }
 0xb0f   : > { %v1256_v50 = vadd.f32 1e-05, %v1255_v49 }
 0xb11   : > { %1720 = vrsqrt.f32 %v1256_v50 }
 0xb1b   : > { %v1721_v51 = vpop.eup %1720 }
 0xb1c   : > { %v1258_v53 = vmul.f32 %v1721_v51, %v1250_v45 }
 0xb1e   : > { %v1263_v55 = vmul.f32 %v1439_v52, %v1258_v53 }
 0xb20   : > { %v1268_v56 = vadd.f32 %v1440_v54, %v1263_v55 }
 0xb22   : > { %1269 = vst.msk [vmem:[%s383_s16] sm:$0xff] %vm499_vm5, %v1268_v56 }
 0xb23   : > { %1819 = shalt.err (!%p1816_p9)
}
 0xb24   : > { %s1820_s11 = scalar_lea.hbm %s2308_s20, 128  ;;  %s1824_s9 = scalar_lea.hbm %s2409_s17, 512 }
 0xb25   : > { %p1821_p11 = scmp.ne.s32.totalorder %s2308_s20, %s1820_s11  ;;  %p1825_p2 = scmp.lt.u32.totalorder %s2308_s20, %s2409_s17 }
 0xb26   : > { %p1826_p0 = scmp.lt.u32.totalorder %s1824_s9, %s1820_s11  ;;  %p1828_p10 = scmp.lt.u32.totalorder %s1820_s11, %s2308_s20 }
 0xb27   : > { %p1822_p13 = pnand %p1821_p11, %p2410_p12 }
 0xb28   : > { %p1827_p8 = por %p1826_p0, %p1825_p2 }
 0xb29   : > { %p1823_p3 = pneg %p1822_p13 }
 0xb2a   : > { %p1829_p1 = por %p1828_p10, %p1827_p8 }
 0xb2c   : > { %p1830_p4 = pnand %p1829_p1, %p1823_p3 }
 0xb2e   : > { %1833 = shalt.err (!%p1830_p4)
}
 0xb2f   : > { %1584 = dma.vmem_to_hbm [thread:$0]  (%p2410_p12), %s2310_s28, 128, %s2308_s20, %s1271_s12  }
 0xb30 PF: > { %s2411_s15 = sld [smem:[#allocation18_spill]]  ;;  %s2412_s19 = sld [smem:[#allocation14_spill]] }
 0xb31   : > { %s2413_s30 = sld [smem:[#allocation21_spill]] }
 0xb36   : > { %p1606_p5 = scmp.ge.s32.totalorder %s2411_s15, 2  ;;  %s1298_s24 = sand.u32 1, %s2412_s19  }
 0xb37   : > { %p2414_p6 = scmp.ne.s32.totalorder %s2413_s30, 0  ;;  %s1299_s26 = scalar_lea.sflag [#allocation6], %s1298_s24 }
 0xb39   : > { %p1597_p7 = pnand %p1606_p5, %p2414_p6 }
 0xb3b   : > { %1875 = dma.done.wait (!%p1597_p7), %s1299_s26, 128  }
 0xb3c   : > { %1877 = vsyncadd (!%p1597_p7), %s1299_s26, 4294967168  ;;  %s24_s16 = sadd.s32 1, %s2411_s15   ;;  %s2415_s13 = sld [smem:[#allocation15_spill]] }
 0xb3d   : > { %p21_p9 = scmp.ge.s32.totalorder %s24_s16, 6   ;;  %s2416_s11 = sld [smem:[#allocation22_spill]] }
 0xb3e   : > { %s2417_s12 = sld [smem:[#allocation16_spill]]  ;;  %s2418_s23 = sld [smem:[#allocation17_spill]] }
 0xb3f   : > { %s2419_s14 = sld [smem:[#allocation19_spill]]  ;;  %s2420_s15 = sld [smem:[#allocation20_spill]] }
 0xb40   : > { %s2421_s30 = smov %s1884_s10  ;;  %23 = sbr.rel (!%p21_p9) target bundleno = 9 (0x9), region = 109 }
 0xb42   : > { %s2422_s10 = smov %s2415_s13 }
 0xb44   : > { %s2423_s13 = smov %s2418_s23 }
 0xb47   :  { %1304 = vsyncpa [#allocation5], 1 }
 0xb48   :  { %1306 = vsyncpa [#allocation5 + $0x1], 1 }
 0xb49   :  { %1307 = vsyncpa [#allocation8], 1 }
 0xb4a   :  { %1308 = vsyncpa [#allocation6], 1 }
 0xb4b   :  { %1310 = vsyncpa [#allocation6 + $0x1], 1 }

</bundles_post_ra>
